<compile_context>
chip_gen: v6e
topology: v6e:2x2x1
jax: 0.10.0
libtpu: 0.0.40
codegen_flags: <defaults>
</compile_context>

<pallas_src>
import jax
import jax.numpy as jnp
from jax.experimental import pallas as pl
from jax.experimental.pallas import tpu as pltpu

# --- hyperparameters (small, deterministic) ---
T = 8    # data['INPUT_MAX_LENGTH']
B = 2    # h_params['batch_size']
E = 16   # h_params['char_embd_dim']
H = 32   # h_params['hidden_layer_neurons']
L = 2    # h_params['number_of_layers']
V = 20   # data['source_len'] (vocab size)

# Merged (wavefront) weight column layout; every block is H=32 lanes wide:
#   c0 [0H,1H): r0 (hh)        c4 [4H,5H): n_h0 (hh 'new', scaled by r0)
#   c1 [1H,2H): z0 (hh)        c5 [5H,6H): n_i1 (ih 'new' of layer 1)
#   c2 [2H,3H): r1 (ih+hh)     c6 [6H,7H): n_h1 (hh 'new', scaled by r1)
#   c3 [3H,4H): z1 (ih+hh)     c7 [7H,8H): zero weight; gi row carries gi_n0 here
# Rows 0..H-1 of the weight take h0, rows H..2H-1 take h1.


def _gru_cell(x, h_prev, w_ih, w_hh, b_ih, b_hh):
    """Reference-only PyTorch-semantics GRU cell (gate order [r, z, n])."""
    gi = jnp.dot(x, w_ih) + b_ih
    gh = jnp.dot(h_prev, w_hh) + b_hh
    i_r, i_z, i_n = gi[:, :H], gi[:, H:2 * H], gi[:, 2 * H:]
    h_r, h_z, h_n = gh[:, :H], gh[:, H:2 * H], gh[:, 2 * H:]
    r = jax.nn.sigmoid(i_r + h_r)
    z = jax.nn.sigmoid(i_z + h_z)
    n = jnp.tanh(i_n + r * h_n)
    return (1.0 - z) * n + z * h_prev


def encoder_kernel(gi_ref, h_init_ref, w_ref, states_ref):
    """Single invocation, everything resident in VMEM.

    gi_ref:     ((T+1)*B, 8H)  per-step layer-0 input projections + all biases
                               (row group T is bias-only, used by the epilogue)
    h_init_ref: (L*B, H)       initial hidden states [layer0 rows | layer1 rows]
    w_ref:      (2H, 8H)       block-merged recurrent weight (rows: [h0 | h1])
    states_ref: (T*B, 2H)      out; rows of step t = [h0_t | h1_t] per batch elem
    """
    w = w_ref[...]
    h0 = h_init_ref[0:B, :]            # (B, H) layer-0 hidden, carried in vregs
    h1 = h_init_ref[B:2 * B, :]        # (B, H) layer-1 hidden, carried in vregs

    # Wavefront over the layer diagonal (fully unrolled):
    #   t == -1 : prologue, layer-0 step 0 only
    #   0..T-2  : layer-1 step t + layer-0 step t+1 from one matmul
    #   T-1     : epilogue, layer-1 step T-1 only
    for t in range(-1, T):
        gi = gi_ref[(t + 1) * B:(t + 2) * B, :]                  # (B, 8H)
        xin = jnp.concatenate([h0, h1], axis=1)                  # (B, 2H)
        s = jnp.dot(xin, w, preferred_element_type=jnp.float32) + gi   # (B, 8H)
        rz = jax.nn.sigmoid(s[:, :4 * H])     # one EUP pass: [r0 | z0 | r1 | z1]

        if t >= 0:
            # ---- layer-1 update for timestep t (inputs h0_t, h1_{t-1}) ----
            r1 = rz[:, 2 * H:3 * H]
            z1 = rz[:, 3 * H:4 * H]
            n1 = jnp.tanh(s[:, 5 * H:6 * H] + r1 * s[:, 6 * H:7 * H])
            h1 = n1 + z1 * (h1 - n1)
            # Record timestep t; these stores sit off the recurrence chain.
            states_ref[t * B:(t + 1) * B, 0:H] = h0
            states_ref[t * B:(t + 1) * B, H:2 * H] = h1

        if t + 1 < T:
            # ---- layer-0 update for timestep t+1 (gh0 from the same matmul) ----
            r0 = rz[:, 0:H]
            z0 = rz[:, H:2 * H]
            # gi_n0 is read from the gi slab (not from s) so its realignment
            # does not sit on the serial matmul->gate chain.
            n0 = jnp.tanh(gi[:, 7 * H:8 * H] + r0 * s[:, 4 * H:5 * H])
            h0 = n0 + z0 * (h0 - n0)


@jax.jit
def encoder_forward(tokens, h0, emb_table, params):
    """tokens: (B, T) int32; h0: (L, B, H) f32.
    Returns (encoder_states (T, L, B, H), final_state (L, B, H))."""
    (wih0, whh0, bih0, bhh0, wih1, whh1, bih1, bhh1) = params
    f32 = jnp.float32
    zh = jnp.zeros((H, H), f32)

    # --- merged recurrent weight (2H, 8H); column layout documented above ---
    w_top = jnp.concatenate(
        [whh0[:, :2 * H],        # c0,c1: r0,z0 hh
         wih1[:, :2 * H],        # c2,c3: r1,z1 ih
         whh0[:, 2 * H:],        # c4:    n_h0
         wih1[:, 2 * H:],        # c5:    n_i1
         zh, zh], axis=1)        # c6,c7: zero
    w_bot = jnp.concatenate(
        [jnp.zeros((H, 2 * H), f32),   # c0,c1
         whh1[:, :2 * H],              # c2,c3: r1,z1 hh
         zh, zh,                       # c4,c5
         whh1[:, 2 * H:],              # c6:    n_h1
         zh], axis=1)                  # c7
    w_merged = jnp.concatenate([w_top, w_bot], axis=0)                 # (2H, 8H)

    # --- time-invariant bias row (same column layout) ---
    bias = jnp.concatenate(
        [bhh0[:, :2 * H],                               # c0,c1: b_hr0, b_hz0
         bih1[:, :2 * H] + bhh1[:, :2 * H],             # c2,c3
         bhh0[:, 2 * H:],                               # c4: b_hn0
         bih1[:, 2 * H:],                               # c5: b_in1
         bhh1[:, 2 * H:],                               # c6: b_hn1
         jnp.zeros((1, H), f32)], axis=1)               # c7
    # TODO(synk): tokens could be scalar-prefetched into SMEM to also move the
    # embedding gather in-kernel; kept as wrapper glue (not the hot path).
    proj = jnp.dot(emb_table.astype(f32), wih0) + bih0                 # (V, 3H)
    gi0 = jnp.transpose(proj[tokens], (1, 0, 2))                       # (T, B, 3H)
    gi_pad = jnp.concatenate(
        [gi0[:, :, :2 * H],                             # c0,c1: gi0 r,z
         jnp.zeros((T, B, 5 * H), f32),                 # c2..c6
         gi0[:, :, 2 * H:]], axis=2)                    # c7:    gi0 n
    gi_pad = jnp.concatenate([gi_pad, jnp.zeros((1, B, 8 * H), f32)], axis=0)
    gi_rows = (gi_pad + bias).reshape((T + 1) * B, 8 * H)              # ((T+1)B, 8H)

    h_init = h0.astype(f32).reshape(L * B, H)

    flops = 2 * (T + 1) * B * (2 * H) * (8 * H)
    transcendentals = (T + 1) * B * 4 * H + 2 * T * B * H
    bytes_accessed = 4 * ((T + 1) * B * 8 * H + L * B * H + 2 * H * 8 * H
                          + T * B * 2 * H)

    vmem = pl.BlockSpec(memory_space=pltpu.MemorySpace.VMEM)
    states_flat = pl.pallas_call(
        encoder_kernel,
        out_shape=jax.ShapeDtypeStruct((T * B, 2 * H), jnp.float32),
        in_specs=[vmem, vmem, vmem],
        out_specs=vmem,
        cost_estimate=pl.CostEstimate(flops=flops,
                                      transcendentals=transcendentals,
                                      bytes_accessed=bytes_accessed),
    )(gi_rows, h_init, w_merged)

    # (T*B, L*H) -> (T, B, L, H) -> (T, L, B, H); final state = last timestep.
    states = jnp.transpose(states_flat.reshape(T, B, L, H), (0, 2, 1, 3))
    final = states[T - 1]
    return states, final


def reference_forward(tokens, h0, emb_table, params):
    """Pure-JAX reference of the PyTorch Encoder.forward (GRU branch), unfused."""
    (wih0, whh0, bih0, bhh0, wih1, whh1, bih1, bhh1) = params
    h = h0
    states = []
    for i in range(T):
        x = emb_table[tokens[:, i]]                                   # (B, E)
        h0_new = _gru_cell(x, h[0], wih0, whh0, bih0, bhh0)
        h1_new = _gru_cell(h0_new, h[1], wih1, whh1, bih1, bhh1)
        h = jnp.stack([h0_new, h1_new], axis=0)
        states.append(h)
    return jnp.stack(states, axis=0), h


def init_params(key):
    """Deterministic parameter init (shapes follow nn.Embedding + nn.GRU)."""
    ks = jax.random.split(key, 9)
    k = 1.0 / jnp.sqrt(jnp.float32(H))
    u = lambda kk, shape: jax.random.uniform(kk, shape, jnp.float32, -k, k)
    emb_table = jax.random.normal(ks[0], (V, E), jnp.float32)
    # layer 0: input dim E ; layer 1: input dim H. Stored pre-transposed as (in, 3H).
    wih0 = u(ks[1], (E, 3 * H))
    whh0 = u(ks[2], (H, 3 * H))
    bih0 = u(ks[3], (1, 3 * H))
    bhh0 = u(ks[4], (1, 3 * H))
    wih1 = u(ks[5], (H, 3 * H))
    whh1 = u(ks[6], (H, 3 * H))
    bih1 = u(ks[7], (1, 3 * H))
    bhh1 = u(ks[8], (1, 3 * H))
    return emb_table, (wih0, whh0, bih0, bhh0, wih1, whh1, bih1, bhh1)


if __name__ == "__main__":
    key = jax.random.PRNGKey(0)
    k_tok, k_par = jax.random.split(key)
    tokens = jax.random.randint(k_tok, (B, T), 0, V, dtype=jnp.int32)
    h0 = jnp.zeros((L, B, H), jnp.float32)   # Encoder.getInitialState()
    emb_table, params = init_params(k_par)

    states, final = encoder_forward(tokens, h0, emb_table, params)
    jax.block_until_ready((states, final))

    ref_states, ref_final = reference_forward(tokens, h0, emb_table, params)
    assert states.shape == (T, L, B, H) and final.shape == (L, B, H)
    assert jnp.allclose(states, ref_states, atol=1e-5, rtol=1e-5)
    assert jnp.allclose(final, ref_final, atol=1e-5, rtol=1e-5)
    print("KERNEL_OK")
</pallas_src>

<mosaic_0001>
module attributes {stable_mosaic.version = 11 : i64} {
  func.func @encoder_kernel(%arg0: memref<18x256xf32, #tpu.memory_space<vmem>>, %arg1: memref<4x32xf32, #tpu.memory_space<vmem>>, %arg2: memref<64x256xf32, #tpu.memory_space<vmem>>, %arg3: memref<16x64xf32, #tpu.memory_space<vmem>>) attributes {dimension_semantics = [], scalar_prefetch = 0 : i64, scratch_operands = 0 : i64, tpu.core_type = #tpu.core_type<tc>} {
    %c0 = arith.constant 0 : index
    %c0_0 = arith.constant 0 : index
    %0 = vector.load %arg2[%c0, %c0_0] : memref<64x256xf32, #tpu.memory_space<vmem>>, vector<64x256xf32>
    %c0_1 = arith.constant 0 : index
    %c0_2 = arith.constant 0 : index
    %1 = vector.load %arg1[%c0_1, %c0_2] : memref<4x32xf32, #tpu.memory_space<vmem>>, vector<2x32xf32>
    %c2 = arith.constant 2 : index
    %c0_3 = arith.constant 0 : index
    %2 = vector.load %arg1[%c2, %c0_3] : memref<4x32xf32, #tpu.memory_space<vmem>>, vector<2x32xf32>
    %c0_4 = arith.constant 0 : index
    %c0_5 = arith.constant 0 : index
    %3 = vector.load %arg0[%c0_4, %c0_5] : memref<18x256xf32, #tpu.memory_space<vmem>>, vector<2x256xf32>
    %4 = tpu.concatenate %1, %2 in 1 : vector<2x32xf32>, vector<2x32xf32> -> vector<2x64xf32>
    %cst = arith.constant dense<0.000000e+00> : vector<2x256xf32>
    %5 = tpu.matmul %4, %0, %cst {dimension_numbers = #tpu.dot_dimension_numbers<[1], [0], [0], [1], [0, 0, 1, 1], [], []>} : vector<2x64xf32>, vector<64x256xf32>, vector<2x256xf32> -> vector<2x256xf32>
    %6 = arith.addf %5, %3 : vector<2x256xf32>
    %7 = vector.extract_strided_slice %6 {offsets = [0, 0], sizes = [2, 128], strides = [1, 1]} : vector<2x256xf32> to vector<2x128xf32>
    %8 = arith.negf %7 : vector<2x128xf32>
    %9 = math.exp %8 : vector<2x128xf32>
    %cst_6 = arith.constant 1.000000e+00 : f32
    %10 = vector.broadcast %cst_6 : f32 to vector<2x128xf32>
    %11 = arith.addf %10, %9 : vector<2x128xf32>
    %12 = arith.divf %10, %11 : vector<2x128xf32>
    %13 = vector.extract_strided_slice %12 {offsets = [0, 0], sizes = [2, 32], strides = [1, 1]} : vector<2x128xf32> to vector<2x32xf32>
    %14 = vector.extract_strided_slice %12 {offsets = [0, 32], sizes = [2, 32], strides = [1, 1]} : vector<2x128xf32> to vector<2x32xf32>
    %15 = vector.extract_strided_slice %3 {offsets = [0, 224], sizes = [2, 32], strides = [1, 1]} : vector<2x256xf32> to vector<2x32xf32>
    %16 = vector.extract_strided_slice %6 {offsets = [0, 128], sizes = [2, 32], strides = [1, 1]} : vector<2x256xf32> to vector<2x32xf32>
    %17 = arith.mulf %13, %16 : vector<2x32xf32>
    %18 = arith.addf %15, %17 : vector<2x32xf32>
    %19 = math.tanh %18 : vector<2x32xf32>
    %20 = arith.subf %1, %19 : vector<2x32xf32>
    %21 = arith.mulf %14, %20 : vector<2x32xf32>
    %22 = arith.addf %19, %21 : vector<2x32xf32>
    %c2_7 = arith.constant 2 : index
    %c0_8 = arith.constant 0 : index
    %23 = vector.load %arg0[%c2_7, %c0_8] : memref<18x256xf32, #tpu.memory_space<vmem>>, vector<2x256xf32>
    %24 = tpu.concatenate %22, %2 in 1 : vector<2x32xf32>, vector<2x32xf32> -> vector<2x64xf32>
    %cst_9 = arith.constant dense<0.000000e+00> : vector<2x256xf32>
    %25 = tpu.matmul %24, %0, %cst_9 {dimension_numbers = #tpu.dot_dimension_numbers<[1], [0], [0], [1], [0, 0, 1, 1], [], []>} : vector<2x64xf32>, vector<64x256xf32>, vector<2x256xf32> -> vector<2x256xf32>
    %26 = arith.addf %25, %23 : vector<2x256xf32>
    %27 = vector.extract_strided_slice %26 {offsets = [0, 0], sizes = [2, 128], strides = [1, 1]} : vector<2x256xf32> to vector<2x128xf32>
    %28 = arith.negf %27 : vector<2x128xf32>
    %29 = math.exp %28 : vector<2x128xf32>
    %cst_10 = arith.constant 1.000000e+00 : f32
    %30 = vector.broadcast %cst_10 : f32 to vector<2x128xf32>
    %31 = arith.addf %30, %29 : vector<2x128xf32>
    %32 = arith.divf %30, %31 : vector<2x128xf32>
    %33 = vector.extract_strided_slice %32 {offsets = [0, 64], sizes = [2, 32], strides = [1, 1]} : vector<2x128xf32> to vector<2x32xf32>
    %34 = vector.extract_strided_slice %32 {offsets = [0, 96], sizes = [2, 32], strides = [1, 1]} : vector<2x128xf32> to vector<2x32xf32>
    %35 = vector.extract_strided_slice %26 {offsets = [0, 160], sizes = [2, 32], strides = [1, 1]} : vector<2x256xf32> to vector<2x32xf32>
    %36 = vector.extract_strided_slice %26 {offsets = [0, 192], sizes = [2, 32], strides = [1, 1]} : vector<2x256xf32> to vector<2x32xf32>
    %37 = arith.mulf %33, %36 : vector<2x32xf32>
    %38 = arith.addf %35, %37 : vector<2x32xf32>
    %39 = math.tanh %38 : vector<2x32xf32>
    %40 = arith.subf %2, %39 : vector<2x32xf32>
    %41 = arith.mulf %34, %40 : vector<2x32xf32>
    %42 = arith.addf %39, %41 : vector<2x32xf32>
    %c0_11 = arith.constant 0 : index
    %c0_12 = arith.constant 0 : index
    %43 = vector.load %arg3[%c0_11, %c0_12] : memref<16x64xf32, #tpu.memory_space<vmem>>, vector<2x32xf32>
    tpu.vector_store %arg3[%c0_11, %c0_12], %22 {strides = array<i32>} : memref<16x64xf32, #tpu.memory_space<vmem>>, vector<2x32xf32>,
    %c0_13 = arith.constant 0 : index
    %c32 = arith.constant 32 : index
    %44 = vector.load %arg3[%c0_13, %c32] : memref<16x64xf32, #tpu.memory_space<vmem>>, vector<2x32xf32>
    tpu.vector_store %arg3[%c0_13, %c32], %42 {strides = array<i32>} : memref<16x64xf32, #tpu.memory_space<vmem>>, vector<2x32xf32>,
    %45 = vector.extract_strided_slice %32 {offsets = [0, 0], sizes = [2, 32], strides = [1, 1]} : vector<2x128xf32> to vector<2x32xf32>
    %46 = vector.extract_strided_slice %32 {offsets = [0, 32], sizes = [2, 32], strides = [1, 1]} : vector<2x128xf32> to vector<2x32xf32>
    %47 = vector.extract_strided_slice %23 {offsets = [0, 224], sizes = [2, 32], strides = [1, 1]} : vector<2x256xf32> to vector<2x32xf32>
    %48 = vector.extract_strided_slice %26 {offsets = [0, 128], sizes = [2, 32], strides = [1, 1]} : vector<2x256xf32> to vector<2x32xf32>
    %49 = arith.mulf %45, %48 : vector<2x32xf32>
    %50 = arith.addf %47, %49 : vector<2x32xf32>
    %51 = math.tanh %50 : vector<2x32xf32>
    %52 = arith.subf %22, %51 : vector<2x32xf32>
    %53 = arith.mulf %46, %52 : vector<2x32xf32>
    %54 = arith.addf %51, %53 : vector<2x32xf32>
    %c4 = arith.constant 4 : index
    %c0_14 = arith.constant 0 : index
    %55 = vector.load %arg0[%c4, %c0_14] : memref<18x256xf32, #tpu.memory_space<vmem>>, vector<2x256xf32>
    %56 = tpu.concatenate %54, %42 in 1 : vector<2x32xf32>, vector<2x32xf32> -> vector<2x64xf32>
    %cst_15 = arith.constant dense<0.000000e+00> : vector<2x256xf32>
    %57 = tpu.matmul %56, %0, %cst_15 {dimension_numbers = #tpu.dot_dimension_numbers<[1], [0], [0], [1], [0, 0, 1, 1], [], []>} : vector<2x64xf32>, vector<64x256xf32>, vector<2x256xf32> -> vector<2x256xf32>
    %58 = arith.addf %57, %55 : vector<2x256xf32>
    %59 = vector.extract_strided_slice %58 {offsets = [0, 0], sizes = [2, 128], strides = [1, 1]} : vector<2x256xf32> to vector<2x128xf32>
    %60 = arith.negf %59 : vector<2x128xf32>
    %61 = math.exp %60 : vector<2x128xf32>
    %cst_16 = arith.constant 1.000000e+00 : f32
    %62 = vector.broadcast %cst_16 : f32 to vector<2x128xf32>
    %63 = arith.addf %62, %61 : vector<2x128xf32>
    %64 = arith.divf %62, %63 : vector<2x128xf32>
    %65 = vector.extract_strided_slice %64 {offsets = [0, 64], sizes = [2, 32], strides = [1, 1]} : vector<2x128xf32> to vector<2x32xf32>
    %66 = vector.extract_strided_slice %64 {offsets = [0, 96], sizes = [2, 32], strides = [1, 1]} : vector<2x128xf32> to vector<2x32xf32>
    %67 = vector.extract_strided_slice %58 {offsets = [0, 160], sizes = [2, 32], strides = [1, 1]} : vector<2x256xf32> to vector<2x32xf32>
    %68 = vector.extract_strided_slice %58 {offsets = [0, 192], sizes = [2, 32], strides = [1, 1]} : vector<2x256xf32> to vector<2x32xf32>
    %69 = arith.mulf %65, %68 : vector<2x32xf32>
    %70 = arith.addf %67, %69 : vector<2x32xf32>
    %71 = math.tanh %70 : vector<2x32xf32>
    %72 = arith.subf %42, %71 : vector<2x32xf32>
    %73 = arith.mulf %66, %72 : vector<2x32xf32>
    %74 = arith.addf %71, %73 : vector<2x32xf32>
    %c2_17 = arith.constant 2 : index
    %c0_18 = arith.constant 0 : index
    %75 = vector.load %arg3[%c2_17, %c0_18] : memref<16x64xf32, #tpu.memory_space<vmem>>, vector<2x32xf32>
    tpu.vector_store %arg3[%c2_17, %c0_18], %54 {strides = array<i32>} : memref<16x64xf32, #tpu.memory_space<vmem>>, vector<2x32xf32>,
    %c2_19 = arith.constant 2 : index
    %c32_20 = arith.constant 32 : index
    %76 = vector.load %arg3[%c2_19, %c32_20] : memref<16x64xf32, #tpu.memory_space<vmem>>, vector<2x32xf32>
    tpu.vector_store %arg3[%c2_19, %c32_20], %74 {strides = array<i32>} : memref<16x64xf32, #tpu.memory_space<vmem>>, vector<2x32xf32>,
    %77 = vector.extract_strided_slice %64 {offsets = [0, 0], sizes = [2, 32], strides = [1, 1]} : vector<2x128xf32> to vector<2x32xf32>
    %78 = vector.extract_strided_slice %64 {offsets = [0, 32], sizes = [2, 32], strides = [1, 1]} : vector<2x128xf32> to vector<2x32xf32>
    %79 = vector.extract_strided_slice %55 {offsets = [0, 224], sizes = [2, 32], strides = [1, 1]} : vector<2x256xf32> to vector<2x32xf32>
    %80 = vector.extract_strided_slice %58 {offsets = [0, 128], sizes = [2, 32], strides = [1, 1]} : vector<2x256xf32> to vector<2x32xf32>
    %81 = arith.mulf %77, %80 : vector<2x32xf32>
    %82 = arith.addf %79, %81 : vector<2x32xf32>
    %83 = math.tanh %82 : vector<2x32xf32>
    %84 = arith.subf %54, %83 : vector<2x32xf32>
    %85 = arith.mulf %78, %84 : vector<2x32xf32>
    %86 = arith.addf %83, %85 : vector<2x32xf32>
    %c6 = arith.constant 6 : index
    %c0_21 = arith.constant 0 : index
    %87 = vector.load %arg0[%c6, %c0_21] : memref<18x256xf32, #tpu.memory_space<vmem>>, vector<2x256xf32>
    %88 = tpu.concatenate %86, %74 in 1 : vector<2x32xf32>, vector<2x32xf32> -> vector<2x64xf32>
    %cst_22 = arith.constant dense<0.000000e+00> : vector<2x256xf32>
    %89 = tpu.matmul %88, %0, %cst_22 {dimension_numbers = #tpu.dot_dimension_numbers<[1], [0], [0], [1], [0, 0, 1, 1], [], []>} : vector<2x64xf32>, vector<64x256xf32>, vector<2x256xf32> -> vector<2x256xf32>
    %90 = arith.addf %89, %87 : vector<2x256xf32>
    %91 = vector.extract_strided_slice %90 {offsets = [0, 0], sizes = [2, 128], strides = [1, 1]} : vector<2x256xf32> to vector<2x128xf32>
    %92 = arith.negf %91 : vector<2x128xf32>
    %93 = math.exp %92 : vector<2x128xf32>
    %cst_23 = arith.constant 1.000000e+00 : f32
    %94 = vector.broadcast %cst_23 : f32 to vector<2x128xf32>
    %95 = arith.addf %94, %93 : vector<2x128xf32>
    %96 = arith.divf %94, %95 : vector<2x128xf32>
    %97 = vector.extract_strided_slice %96 {offsets = [0, 64], sizes = [2, 32], strides = [1, 1]} : vector<2x128xf32> to vector<2x32xf32>
    %98 = vector.extract_strided_slice %96 {offsets = [0, 96], sizes = [2, 32], strides = [1, 1]} : vector<2x128xf32> to vector<2x32xf32>
    %99 = vector.extract_strided_slice %90 {offsets = [0, 160], sizes = [2, 32], strides = [1, 1]} : vector<2x256xf32> to vector<2x32xf32>
    %100 = vector.extract_strided_slice %90 {offsets = [0, 192], sizes = [2, 32], strides = [1, 1]} : vector<2x256xf32> to vector<2x32xf32>
    %101 = arith.mulf %97, %100 : vector<2x32xf32>
    %102 = arith.addf %99, %101 : vector<2x32xf32>
    %103 = math.tanh %102 : vector<2x32xf32>
    %104 = arith.subf %74, %103 : vector<2x32xf32>
    %105 = arith.mulf %98, %104 : vector<2x32xf32>
    %106 = arith.addf %103, %105 : vector<2x32xf32>
    %c4_24 = arith.constant 4 : index
    %c0_25 = arith.constant 0 : index
    %107 = vector.load %arg3[%c4_24, %c0_25] : memref<16x64xf32, #tpu.memory_space<vmem>>, vector<2x32xf32>
    tpu.vector_store %arg3[%c4_24, %c0_25], %86 {strides = array<i32>} : memref<16x64xf32, #tpu.memory_space<vmem>>, vector<2x32xf32>,
    %c4_26 = arith.constant 4 : index
    %c32_27 = arith.constant 32 : index
    %108 = vector.load %arg3[%c4_26, %c32_27] : memref<16x64xf32, #tpu.memory_space<vmem>>, vector<2x32xf32>
    tpu.vector_store %arg3[%c4_26, %c32_27], %106 {strides = array<i32>} : memref<16x64xf32, #tpu.memory_space<vmem>>, vector<2x32xf32>,
    %109 = vector.extract_strided_slice %96 {offsets = [0, 0], sizes = [2, 32], strides = [1, 1]} : vector<2x128xf32> to vector<2x32xf32>
    %110 = vector.extract_strided_slice %96 {offsets = [0, 32], sizes = [2, 32], strides = [1, 1]} : vector<2x128xf32> to vector<2x32xf32>
    %111 = vector.extract_strided_slice %87 {offsets = [0, 224], sizes = [2, 32], strides = [1, 1]} : vector<2x256xf32> to vector<2x32xf32>
    %112 = vector.extract_strided_slice %90 {offsets = [0, 128], sizes = [2, 32], strides = [1, 1]} : vector<2x256xf32> to vector<2x32xf32>
    %113 = arith.mulf %109, %112 : vector<2x32xf32>
    %114 = arith.addf %111, %113 : vector<2x32xf32>
    %115 = math.tanh %114 : vector<2x32xf32>
    %116 = arith.subf %86, %115 : vector<2x32xf32>
    %117 = arith.mulf %110, %116 : vector<2x32xf32>
    %118 = arith.addf %115, %117 : vector<2x32xf32>
    %c8 = arith.constant 8 : index
    %c0_28 = arith.constant 0 : index
    %119 = vector.load %arg0[%c8, %c0_28] : memref<18x256xf32, #tpu.memory_space<vmem>>, vector<2x256xf32>
    %120 = tpu.concatenate %118, %106 in 1 : vector<2x32xf32>, vector<2x32xf32> -> vector<2x64xf32>
    %cst_29 = arith.constant dense<0.000000e+00> : vector<2x256xf32>
    %121 = tpu.matmul %120, %0, %cst_29 {dimension_numbers = #tpu.dot_dimension_numbers<[1], [0], [0], [1], [0, 0, 1, 1], [], []>} : vector<2x64xf32>, vector<64x256xf32>, vector<2x256xf32> -> vector<2x256xf32>
    %122 = arith.addf %121, %119 : vector<2x256xf32>
    %123 = vector.extract_strided_slice %122 {offsets = [0, 0], sizes = [2, 128], strides = [1, 1]} : vector<2x256xf32> to vector<2x128xf32>
    %124 = arith.negf %123 : vector<2x128xf32>
    %125 = math.exp %124 : vector<2x128xf32>
    %cst_30 = arith.constant 1.000000e+00 : f32
    %126 = vector.broadcast %cst_30 : f32 to vector<2x128xf32>
    %127 = arith.addf %126, %125 : vector<2x128xf32>
    %128 = arith.divf %126, %127 : vector<2x128xf32>
    %129 = vector.extract_strided_slice %128 {offsets = [0, 64], sizes = [2, 32], strides = [1, 1]} : vector<2x128xf32> to vector<2x32xf32>
    %130 = vector.extract_strided_slice %128 {offsets = [0, 96], sizes = [2, 32], strides = [1, 1]} : vector<2x128xf32> to vector<2x32xf32>
    %131 = vector.extract_strided_slice %122 {offsets = [0, 160], sizes = [2, 32], strides = [1, 1]} : vector<2x256xf32> to vector<2x32xf32>
    %132 = vector.extract_strided_slice %122 {offsets = [0, 192], sizes = [2, 32], strides = [1, 1]} : vector<2x256xf32> to vector<2x32xf32>
    %133 = arith.mulf %129, %132 : vector<2x32xf32>
    %134 = arith.addf %131, %133 : vector<2x32xf32>
    %135 = math.tanh %134 : vector<2x32xf32>
    %136 = arith.subf %106, %135 : vector<2x32xf32>
    %137 = arith.mulf %130, %136 : vector<2x32xf32>
    %138 = arith.addf %135, %137 : vector<2x32xf32>
    %c6_31 = arith.constant 6 : index
    %c0_32 = arith.constant 0 : index
    %139 = vector.load %arg3[%c6_31, %c0_32] : memref<16x64xf32, #tpu.memory_space<vmem>>, vector<2x32xf32>
    tpu.vector_store %arg3[%c6_31, %c0_32], %118 {strides = array<i32>} : memref<16x64xf32, #tpu.memory_space<vmem>>, vector<2x32xf32>,
    %c6_33 = arith.constant 6 : index
    %c32_34 = arith.constant 32 : index
    %140 = vector.load %arg3[%c6_33, %c32_34] : memref<16x64xf32, #tpu.memory_space<vmem>>, vector<2x32xf32>
    tpu.vector_store %arg3[%c6_33, %c32_34], %138 {strides = array<i32>} : memref<16x64xf32, #tpu.memory_space<vmem>>, vector<2x32xf32>,
    %141 = vector.extract_strided_slice %128 {offsets = [0, 0], sizes = [2, 32], strides = [1, 1]} : vector<2x128xf32> to vector<2x32xf32>
    %142 = vector.extract_strided_slice %128 {offsets = [0, 32], sizes = [2, 32], strides = [1, 1]} : vector<2x128xf32> to vector<2x32xf32>
    %143 = vector.extract_strided_slice %119 {offsets = [0, 224], sizes = [2, 32], strides = [1, 1]} : vector<2x256xf32> to vector<2x32xf32>
    %144 = vector.extract_strided_slice %122 {offsets = [0, 128], sizes = [2, 32], strides = [1, 1]} : vector<2x256xf32> to vector<2x32xf32>
    %145 = arith.mulf %141, %144 : vector<2x32xf32>
    %146 = arith.addf %143, %145 : vector<2x32xf32>
    %147 = math.tanh %146 : vector<2x32xf32>
    %148 = arith.subf %118, %147 : vector<2x32xf32>
    %149 = arith.mulf %142, %148 : vector<2x32xf32>
    %150 = arith.addf %147, %149 : vector<2x32xf32>
    %c10 = arith.constant 10 : index
    %c0_35 = arith.constant 0 : index
    %151 = vector.load %arg0[%c10, %c0_35] : memref<18x256xf32, #tpu.memory_space<vmem>>, vector<2x256xf32>
    %152 = tpu.concatenate %150, %138 in 1 : vector<2x32xf32>, vector<2x32xf32> -> vector<2x64xf32>
    %cst_36 = arith.constant dense<0.000000e+00> : vector<2x256xf32>
    %153 = tpu.matmul %152, %0, %cst_36 {dimension_numbers = #tpu.dot_dimension_numbers<[1], [0], [0], [1], [0, 0, 1, 1], [], []>} : vector<2x64xf32>, vector<64x256xf32>, vector<2x256xf32> -> vector<2x256xf32>
    %154 = arith.addf %153, %151 : vector<2x256xf32>
    %155 = vector.extract_strided_slice %154 {offsets = [0, 0], sizes = [2, 128], strides = [1, 1]} : vector<2x256xf32> to vector<2x128xf32>
    %156 = arith.negf %155 : vector<2x128xf32>
    %157 = math.exp %156 : vector<2x128xf32>
    %cst_37 = arith.constant 1.000000e+00 : f32
    %158 = vector.broadcast %cst_37 : f32 to vector<2x128xf32>
    %159 = arith.addf %158, %157 : vector<2x128xf32>
    %160 = arith.divf %158, %159 : vector<2x128xf32>
    %161 = vector.extract_strided_slice %160 {offsets = [0, 64], sizes = [2, 32], strides = [1, 1]} : vector<2x128xf32> to vector<2x32xf32>
    %162 = vector.extract_strided_slice %160 {offsets = [0, 96], sizes = [2, 32], strides = [1, 1]} : vector<2x128xf32> to vector<2x32xf32>
    %163 = vector.extract_strided_slice %154 {offsets = [0, 160], sizes = [2, 32], strides = [1, 1]} : vector<2x256xf32> to vector<2x32xf32>
    %164 = vector.extract_strided_slice %154 {offsets = [0, 192], sizes = [2, 32], strides = [1, 1]} : vector<2x256xf32> to vector<2x32xf32>
    %165 = arith.mulf %161, %164 : vector<2x32xf32>
    %166 = arith.addf %163, %165 : vector<2x32xf32>
    %167 = math.tanh %166 : vector<2x32xf32>
    %168 = arith.subf %138, %167 : vector<2x32xf32>
    %169 = arith.mulf %162, %168 : vector<2x32xf32>
    %170 = arith.addf %167, %169 : vector<2x32xf32>
    %c8_38 = arith.constant 8 : index
    %c0_39 = arith.constant 0 : index
    %171 = vector.load %arg3[%c8_38, %c0_39] : memref<16x64xf32, #tpu.memory_space<vmem>>, vector<2x32xf32>
    tpu.vector_store %arg3[%c8_38, %c0_39], %150 {strides = array<i32>} : memref<16x64xf32, #tpu.memory_space<vmem>>, vector<2x32xf32>,
    %c8_40 = arith.constant 8 : index
    %c32_41 = arith.constant 32 : index
    %172 = vector.load %arg3[%c8_40, %c32_41] : memref<16x64xf32, #tpu.memory_space<vmem>>, vector<2x32xf32>
    tpu.vector_store %arg3[%c8_40, %c32_41], %170 {strides = array<i32>} : memref<16x64xf32, #tpu.memory_space<vmem>>, vector<2x32xf32>,
    %173 = vector.extract_strided_slice %160 {offsets = [0, 0], sizes = [2, 32], strides = [1, 1]} : vector<2x128xf32> to vector<2x32xf32>
    %174 = vector.extract_strided_slice %160 {offsets = [0, 32], sizes = [2, 32], strides = [1, 1]} : vector<2x128xf32> to vector<2x32xf32>
    %175 = vector.extract_strided_slice %151 {offsets = [0, 224], sizes = [2, 32], strides = [1, 1]} : vector<2x256xf32> to vector<2x32xf32>
    %176 = vector.extract_strided_slice %154 {offsets = [0, 128], sizes = [2, 32], strides = [1, 1]} : vector<2x256xf32> to vector<2x32xf32>
    %177 = arith.mulf %173, %176 : vector<2x32xf32>
    %178 = arith.addf %175, %177 : vector<2x32xf32>
    %179 = math.tanh %178 : vector<2x32xf32>
    %180 = arith.subf %150, %179 : vector<2x32xf32>
    %181 = arith.mulf %174, %180 : vector<2x32xf32>
    %182 = arith.addf %179, %181 : vector<2x32xf32>
    %c12 = arith.constant 12 : index
    %c0_42 = arith.constant 0 : index
    %183 = vector.load %arg0[%c12, %c0_42] : memref<18x256xf32, #tpu.memory_space<vmem>>, vector<2x256xf32>
    %184 = tpu.concatenate %182, %170 in 1 : vector<2x32xf32>, vector<2x32xf32> -> vector<2x64xf32>
    %cst_43 = arith.constant dense<0.000000e+00> : vector<2x256xf32>
    %185 = tpu.matmul %184, %0, %cst_43 {dimension_numbers = #tpu.dot_dimension_numbers<[1], [0], [0], [1], [0, 0, 1, 1], [], []>} : vector<2x64xf32>, vector<64x256xf32>, vector<2x256xf32> -> vector<2x256xf32>
    %186 = arith.addf %185, %183 : vector<2x256xf32>
    %187 = vector.extract_strided_slice %186 {offsets = [0, 0], sizes = [2, 128], strides = [1, 1]} : vector<2x256xf32> to vector<2x128xf32>
    %188 = arith.negf %187 : vector<2x128xf32>
    %189 = math.exp %188 : vector<2x128xf32>
    %cst_44 = arith.constant 1.000000e+00 : f32
    %190 = vector.broadcast %cst_44 : f32 to vector<2x128xf32>
    %191 = arith.addf %190, %189 : vector<2x128xf32>
    %192 = arith.divf %190, %191 : vector<2x128xf32>
    %193 = vector.extract_strided_slice %192 {offsets = [0, 64], sizes = [2, 32], strides = [1, 1]} : vector<2x128xf32> to vector<2x32xf32>
    %194 = vector.extract_strided_slice %192 {offsets = [0, 96], sizes = [2, 32], strides = [1, 1]} : vector<2x128xf32> to vector<2x32xf32>
    %195 = vector.extract_strided_slice %186 {offsets = [0, 160], sizes = [2, 32], strides = [1, 1]} : vector<2x256xf32> to vector<2x32xf32>
    %196 = vector.extract_strided_slice %186 {offsets = [0, 192], sizes = [2, 32], strides = [1, 1]} : vector<2x256xf32> to vector<2x32xf32>
    %197 = arith.mulf %193, %196 : vector<2x32xf32>
    %198 = arith.addf %195, %197 : vector<2x32xf32>
    %199 = math.tanh %198 : vector<2x32xf32>
    %200 = arith.subf %170, %199 : vector<2x32xf32>
    %201 = arith.mulf %194, %200 : vector<2x32xf32>
    %202 = arith.addf %199, %201 : vector<2x32xf32>
    %c10_45 = arith.constant 10 : index
    %c0_46 = arith.constant 0 : index
    %203 = vector.load %arg3[%c10_45, %c0_46] : memref<16x64xf32, #tpu.memory_space<vmem>>, vector<2x32xf32>
    tpu.vector_store %arg3[%c10_45, %c0_46], %182 {strides = array<i32>} : memref<16x64xf32, #tpu.memory_space<vmem>>, vector<2x32xf32>,
    %c10_47 = arith.constant 10 : index
    %c32_48 = arith.constant 32 : index
    %204 = vector.load %arg3[%c10_47, %c32_48] : memref<16x64xf32, #tpu.memory_space<vmem>>, vector<2x32xf32>
    tpu.vector_store %arg3[%c10_47, %c32_48], %202 {strides = array<i32>} : memref<16x64xf32, #tpu.memory_space<vmem>>, vector<2x32xf32>,
    %205 = vector.extract_strided_slice %192 {offsets = [0, 0], sizes = [2, 32], strides = [1, 1]} : vector<2x128xf32> to vector<2x32xf32>
    %206 = vector.extract_strided_slice %192 {offsets = [0, 32], sizes = [2, 32], strides = [1, 1]} : vector<2x128xf32> to vector<2x32xf32>
    %207 = vector.extract_strided_slice %183 {offsets = [0, 224], sizes = [2, 32], strides = [1, 1]} : vector<2x256xf32> to vector<2x32xf32>
    %208 = vector.extract_strided_slice %186 {offsets = [0, 128], sizes = [2, 32], strides = [1, 1]} : vector<2x256xf32> to vector<2x32xf32>
    %209 = arith.mulf %205, %208 : vector<2x32xf32>
    %210 = arith.addf %207, %209 : vector<2x32xf32>
    %211 = math.tanh %210 : vector<2x32xf32>
    %212 = arith.subf %182, %211 : vector<2x32xf32>
    %213 = arith.mulf %206, %212 : vector<2x32xf32>
    %214 = arith.addf %211, %213 : vector<2x32xf32>
    %c14 = arith.constant 14 : index
    %c0_49 = arith.constant 0 : index
    %215 = vector.load %arg0[%c14, %c0_49] : memref<18x256xf32, #tpu.memory_space<vmem>>, vector<2x256xf32>
    %216 = tpu.concatenate %214, %202 in 1 : vector<2x32xf32>, vector<2x32xf32> -> vector<2x64xf32>
    %cst_50 = arith.constant dense<0.000000e+00> : vector<2x256xf32>
    %217 = tpu.matmul %216, %0, %cst_50 {dimension_numbers = #tpu.dot_dimension_numbers<[1], [0], [0], [1], [0, 0, 1, 1], [], []>} : vector<2x64xf32>, vector<64x256xf32>, vector<2x256xf32> -> vector<2x256xf32>
    %218 = arith.addf %217, %215 : vector<2x256xf32>
    %219 = vector.extract_strided_slice %218 {offsets = [0, 0], sizes = [2, 128], strides = [1, 1]} : vector<2x256xf32> to vector<2x128xf32>
    %220 = arith.negf %219 : vector<2x128xf32>
    %221 = math.exp %220 : vector<2x128xf32>
    %cst_51 = arith.constant 1.000000e+00 : f32
    %222 = vector.broadcast %cst_51 : f32 to vector<2x128xf32>
    %223 = arith.addf %222, %221 : vector<2x128xf32>
    %224 = arith.divf %222, %223 : vector<2x128xf32>
    %225 = vector.extract_strided_slice %224 {offsets = [0, 64], sizes = [2, 32], strides = [1, 1]} : vector<2x128xf32> to vector<2x32xf32>
    %226 = vector.extract_strided_slice %224 {offsets = [0, 96], sizes = [2, 32], strides = [1, 1]} : vector<2x128xf32> to vector<2x32xf32>
    %227 = vector.extract_strided_slice %218 {offsets = [0, 160], sizes = [2, 32], strides = [1, 1]} : vector<2x256xf32> to vector<2x32xf32>
    %228 = vector.extract_strided_slice %218 {offsets = [0, 192], sizes = [2, 32], strides = [1, 1]} : vector<2x256xf32> to vector<2x32xf32>
    %229 = arith.mulf %225, %228 : vector<2x32xf32>
    %230 = arith.addf %227, %229 : vector<2x32xf32>
    %231 = math.tanh %230 : vector<2x32xf32>
    %232 = arith.subf %202, %231 : vector<2x32xf32>
    %233 = arith.mulf %226, %232 : vector<2x32xf32>
    %234 = arith.addf %231, %233 : vector<2x32xf32>
    %c12_52 = arith.constant 12 : index
    %c0_53 = arith.constant 0 : index
    %235 = vector.load %arg3[%c12_52, %c0_53] : memref<16x64xf32, #tpu.memory_space<vmem>>, vector<2x32xf32>
    tpu.vector_store %arg3[%c12_52, %c0_53], %214 {strides = array<i32>} : memref<16x64xf32, #tpu.memory_space<vmem>>, vector<2x32xf32>,
    %c12_54 = arith.constant 12 : index
    %c32_55 = arith.constant 32 : index
    %236 = vector.load %arg3[%c12_54, %c32_55] : memref<16x64xf32, #tpu.memory_space<vmem>>, vector<2x32xf32>
    tpu.vector_store %arg3[%c12_54, %c32_55], %234 {strides = array<i32>} : memref<16x64xf32, #tpu.memory_space<vmem>>, vector<2x32xf32>,
    %237 = vector.extract_strided_slice %224 {offsets = [0, 0], sizes = [2, 32], strides = [1, 1]} : vector<2x128xf32> to vector<2x32xf32>
    %238 = vector.extract_strided_slice %224 {offsets = [0, 32], sizes = [2, 32], strides = [1, 1]} : vector<2x128xf32> to vector<2x32xf32>
    %239 = vector.extract_strided_slice %215 {offsets = [0, 224], sizes = [2, 32], strides = [1, 1]} : vector<2x256xf32> to vector<2x32xf32>
    %240 = vector.extract_strided_slice %218 {offsets = [0, 128], sizes = [2, 32], strides = [1, 1]} : vector<2x256xf32> to vector<2x32xf32>
    %241 = arith.mulf %237, %240 : vector<2x32xf32>
    %242 = arith.addf %239, %241 : vector<2x32xf32>
    %243 = math.tanh %242 : vector<2x32xf32>
    %244 = arith.subf %214, %243 : vector<2x32xf32>
    %245 = arith.mulf %238, %244 : vector<2x32xf32>
    %246 = arith.addf %243, %245 : vector<2x32xf32>
    %c16 = arith.constant 16 : index
    %c0_56 = arith.constant 0 : index
    %247 = vector.load %arg0[%c16, %c0_56] : memref<18x256xf32, #tpu.memory_space<vmem>>, vector<2x256xf32>
    %248 = tpu.concatenate %246, %234 in 1 : vector<2x32xf32>, vector<2x32xf32> -> vector<2x64xf32>
    %cst_57 = arith.constant dense<0.000000e+00> : vector<2x256xf32>
    %249 = tpu.matmul %248, %0, %cst_57 {dimension_numbers = #tpu.dot_dimension_numbers<[1], [0], [0], [1], [0, 0, 1, 1], [], []>} : vector<2x64xf32>, vector<64x256xf32>, vector<2x256xf32> -> vector<2x256xf32>
    %250 = arith.addf %249, %247 : vector<2x256xf32>
    %251 = vector.extract_strided_slice %250 {offsets = [0, 0], sizes = [2, 128], strides = [1, 1]} : vector<2x256xf32> to vector<2x128xf32>
    %252 = arith.negf %251 : vector<2x128xf32>
    %253 = math.exp %252 : vector<2x128xf32>
    %cst_58 = arith.constant 1.000000e+00 : f32
    %254 = vector.broadcast %cst_58 : f32 to vector<2x128xf32>
    %255 = arith.addf %254, %253 : vector<2x128xf32>
    %256 = arith.divf %254, %255 : vector<2x128xf32>
    %257 = vector.extract_strided_slice %256 {offsets = [0, 64], sizes = [2, 32], strides = [1, 1]} : vector<2x128xf32> to vector<2x32xf32>
    %258 = vector.extract_strided_slice %256 {offsets = [0, 96], sizes = [2, 32], strides = [1, 1]} : vector<2x128xf32> to vector<2x32xf32>
    %259 = vector.extract_strided_slice %250 {offsets = [0, 160], sizes = [2, 32], strides = [1, 1]} : vector<2x256xf32> to vector<2x32xf32>
    %260 = vector.extract_strided_slice %250 {offsets = [0, 192], sizes = [2, 32], strides = [1, 1]} : vector<2x256xf32> to vector<2x32xf32>
    %261 = arith.mulf %257, %260 : vector<2x32xf32>
    %262 = arith.addf %259, %261 : vector<2x32xf32>
    %263 = math.tanh %262 : vector<2x32xf32>
    %264 = arith.subf %234, %263 : vector<2x32xf32>
    %265 = arith.mulf %258, %264 : vector<2x32xf32>
    %266 = arith.addf %263, %265 : vector<2x32xf32>
    %c14_59 = arith.constant 14 : index
    %c0_60 = arith.constant 0 : index
    %267 = vector.load %arg3[%c14_59, %c0_60] : memref<16x64xf32, #tpu.memory_space<vmem>>, vector<2x32xf32>
    tpu.vector_store %arg3[%c14_59, %c0_60], %246 {strides = array<i32>} : memref<16x64xf32, #tpu.memory_space<vmem>>, vector<2x32xf32>,
    %c14_61 = arith.constant 14 : index
    %c32_62 = arith.constant 32 : index
    %268 = vector.load %arg3[%c14_61, %c32_62] : memref<16x64xf32, #tpu.memory_space<vmem>>, vector<2x32xf32>
    tpu.vector_store %arg3[%c14_61, %c32_62], %266 {strides = array<i32>} : memref<16x64xf32, #tpu.memory_space<vmem>>, vector<2x32xf32>,
    return
  }
}

</mosaic_0001>

<bundles_post_ra>
// kernel: encoder_forward.1
= control target key start
LH: loop header
LB: loop body
LE: loop exit
PB: predicated region body
PF: predicated region fallthrough
CT: control target
= control target key end

     0   :  { %v1309_v2 = vmov 0.0   ;;  %s1310_s16 = smov 32   ;;  %vm38_vm0 = vcmask 261120   ;;  %vm40_vm1 = vcmask 523264   ;;  %s1311_s25 = smov 96   ;;  %vm258_vm2 = vcmask 254976   ;;  %s1770_s1 = inlined_call_operand.vmem [shape: f32[4,32], index: 1, kind: input, shape index: {}]   ;;  %s1771_s2 = inlined_call_operand.vmem [shape: f32[64,256], index: 2, kind: input, shape index: {}]   ;;  %s1772_s0 = inlined_call_operand.vmem [shape: f32[18,256], index: 0, kind: input, shape index: {}]   ;;  %s1773_s3 = inlined_call_operand.vmem [shape: f32[16,64], index: 3, kind: output, shape index: {}]  }
   0x1   :  { %v1336_v0 = vld [vmem:[%s1770_s1 + $0x2] sm:$0x3]  ;;  %v1341_v1 = vld [vmem:[%s1771_s2 + $0x78] sm:$0xff]  ;;  %108 = vmatprep.mubr.f32.mxu0 %v1309_v2  ;;  %223 = vmatprep.mubr.f32.mxu1 %v1309_v2  ;;  %v1351_v3 = vld [vmem:[%s1771_s2 + $0x70] sm:$0xff]  ;;  %s1312_s26 = smov 64   ;;  %vm260_vm3 = vcmask 517376  }
   0x2   :  { %35 = vrot.lane.b32.xlu0 %v1336_v0, %s1310_s16  ;;  %60 = vmatprep.subr.mxu0 %v1341_v1  ;;  %v1356_v4 = vld [vmem:[%s1771_s2 + $0x68] sm:$0xff]  ;;  %v1361_v5 = vld [vmem:[%s1771_s2 + $0x60] sm:$0xff]  ;;  %v1367_v6 = vld [vmem:[%s1771_s2 + $0x58] sm:$0xff]  ;;  %vm398_vm4 = vcmask 257026   ;;  %vm538_vm5 = vcmask 259076   ;;  %vm672_vm6 = vcmask 261126  }
   0x3   :  { %61 = vmatpush1.msra.mxu0 %v1351_v3  ;;  %175 = vmatprep.subr.mxu1 %v1341_v1  ;;  %v1374_v7 = vld [vmem:[%s1771_s2 + $0x50] sm:$0xff]  ;;  %v1381_v8 = vld [vmem:[%s1771_s2 + $0x48] sm:$0xff]  ;;  %v1388_v9 = vld [vmem:[%s1771_s2 + $0x40] sm:$0xff] }
   0x4   :  { %62 = vmatprep.subr.mxu0 %v1356_v4  ;;  %176 = vmatpush1.msra.mxu1 %v1351_v3  ;;  %v1395_v10 = vld [vmem:[%s1771_s2 + $0x38] sm:$0xff]  ;;  %v1402_v11 = vld [vmem:[%s1771_s2 + $0x30] sm:$0xff]  ;;  %v1409_v12 = vld [vmem:[%s1771_s2 + $0x28] sm:$0xff] }
   0x5   :  { %63 = vmatpush1.msra.mxu0 %v1361_v5  ;;  %177 = vmatprep.subr.mxu1 %v1356_v4  ;;  %v1416_v13 = vld [vmem:[%s1771_s2 + $0x20] sm:$0xff]  ;;  %v1423_v14 = vld [vmem:[%s1771_s2 + $0x18] sm:$0xff]  ;;  %v1430_v15 = vld [vmem:[%s1771_s2 + $0x10] sm:$0xff] }
   0x6   :  { %64 = vmatprep.subr.mxu0 %v1367_v6  ;;  %178 = vmatpush1.msra.mxu1 %v1361_v5  ;;  %v1437_v16 = vld [vmem:[%s1771_s2 + $0x8] sm:$0xff]  ;;  %v1444_v17 = vld [vmem:[%s1771_s2] sm:$0xff] }
   0x7   :  { %65 = vmatpush1.msra.mxu0 %v1374_v7  ;;  %179 = vmatprep.subr.mxu1 %v1367_v6  ;;  %v30_v18 = vld [vmem:[%s1770_s1] sm:$0x3]  ;;  %v33_v27 = vld [vmem:[%s1772_s0 + $0x8] sm:$0x3]  ;;  %v143_v43 = vld [vmem:[%s1772_s0] sm:$0xc] }
   0x8   :  { %66 = vmatprep.subr.mxu0 %v1381_v8  ;;  %180 = vmatpush1.msra.mxu1 %v1374_v7  ;;  %v32_v21 = vld [vmem:[%s1772_s0] sm:$0x3]  ;;  %v152_v44 = vrot.slane %v143_v43, 2  ;;  %v144_v50 = vld [vmem:[%s1772_s0 + $0x8] sm:$0xc] }
   0x9   :  { %67 = vmatpush1.msra.mxu0 %v1388_v9  ;;  %181 = vmatprep.subr.mxu1 %v1381_v8  ;;  %v153_v51 = vrot.slane %v144_v50, 2 }
   0xa   :  { %68 = vmatprep.subr.mxu0 %v1395_v10  ;;  %182 = vmatpush1.msra.mxu1 %v1388_v9 }
   0xb   :  { %69 = vmatpush1.msra.mxu0 %v1402_v11  ;;  %183 = vmatprep.subr.mxu1 %v1395_v10 }
   0xc   :  { %70 = vmatprep.subr.mxu0 %v1409_v12  ;;  %184 = vmatpush1.msra.mxu1 %v1402_v11 }
   0xd   :  { %71 = vmatpush1.msra.mxu0 %v1416_v13  ;;  %185 = vmatprep.subr.mxu1 %v1409_v12 }
   0xe   :  { %72 = vmatprep.subr.mxu0 %v1423_v14  ;;  %186 = vmatpush1.msra.mxu1 %v1416_v13 }
   0xf   :  { %73 = vmatpush1.msra.mxu0 %v1430_v15  ;;  %187 = vmatprep.subr.mxu1 %v1423_v14 }
  0x10   :  { %74 = vmatprep.subr.mxu0 %v1437_v16  ;;  %188 = vmatpush1.msra.mxu1 %v1430_v15 }
  0x11   :  { %75 = vmatpush1.msra.mxu0 %v1444_v17  ;;  %189 = vmatprep.subr.mxu1 %v1437_v16 }
  0x12   :  { %190 = vmatpush1.msra.mxu1 %v1444_v17  ;;  %319 = vmatprep.subr.mxu0 %v1341_v1 }
  0x13   :  { %459 = vmatprep.subr.mxu1 %v1341_v1 }
  0x74   :  { %v36_v19 = vpop.permute.xlu0 %35 }
  0x75   :  { %v39_v20 = vsel %vm38_vm0, %v30_v18, %v36_v19 }
  0x76   :  { %1219 = vmatmul.mubr.msk.f32.vlgmr.msra.gmra.mxu0 %vm40_vm1, %v39_v20 }
  0x77   :  { %320 = vmatpush1.msra.mxu0 %v1351_v3  ;;  %367 = vmatprep.mubr.f32.mxu0 %v1309_v2 }
  0x78   :  { %321 = vmatprep.subr.mxu0 %v1356_v4 }
  0x79   :  { %322 = vmatpush1.msra.mxu0 %v1361_v5 }
  0x7a   :  { %323 = vmatprep.subr.mxu0 %v1367_v6 }
  0x7b   :  { %324 = vmatpush1.msra.mxu0 %v1374_v7 }
  0x7c   :  { %325 = vmatprep.subr.mxu0 %v1381_v8 }
  0x7d   :  { %326 = vmatpush1.msra.mxu0 %v1388_v9 }
  0x7e   :  { %327 = vmatprep.subr.mxu0 %v1395_v10 }
  0x7f   :  { %328 = vmatpush1.msra.mxu0 %v1402_v11 }
  0x80   :  { %329 = vmatprep.subr.mxu0 %v1409_v12 }
  0x81   :  { %330 = vmatpush1.msra.mxu0 %v1416_v13 }
  0x82   :  { %331 = vmatprep.subr.mxu0 %v1423_v14 }
  0x83   :  { %332 = vmatpush1.msra.mxu0 %v1430_v15 }
  0x84   :  { %333 = vmatprep.subr.mxu0 %v1437_v16 }
  0x85   :  { %334 = vmatpush1.msra.mxu0 %v1444_v17 }
  0x86   :  { %593 = vmatprep.subr.mxu0 %v1341_v1 }
 0x136   :  { %v110_v22 = vpop.f32.mrf.mxu0 }
 0x137   :  { %v111_v23 = vadd.f32 %v110_v22, %v32_v21 }
 0x138   :  { %v112_v28 = vpop.f32.mrf.mxu0 }
 0x139   :  { %v1220_v24 = vmul.f32 -1.442695, %v111_v23  ;;  %v113_v29 = vadd.f32 %v112_v28, %v33_v27 }
 0x13b   :  { %1241 = vpow2.f32 %v1220_v24 }
 0x148   :  { %v1242_v25 = vpop.eup %1241 }
 0x149   :  { %v118_v26 = vadd.f32 1.0, %v1242_v25 }
 0x14b   :  { %1243 = vrcp.f32 %v118_v26 }
 0x158   :  { %v1244_v30 = vpop.eup %1243 }
 0x159   :  { %v121_v31 = vmul.f32 %v1244_v30, %v113_v29 }
 0x15b   :  { %123 = vrot.lane.b32.xlu0 %v121_v31, %s1311_s25 }
 0x1cd   :  { %v124_v32 = vpop.permute.xlu0 %123 }
 0x1ce   :  { %v126_v33 = vadd.f32 %v124_v32, %v33_v27 }
 0x1d0   :  { %1245 = vtanh.f32 %v126_v33  ;;  %v283_v33 = vld [vmem:[%s1772_s0] sm:$0x30] }
 0x1dd   :  { %v1246_v34 = vpop.eup %1245 }
 0x1de   :  { %129 = vrot.lane.b32.xlu1 %v1246_v34, %s1310_s16 }
 0x250   :  { %v130_v35 = vpop.permute.xlu1 %129 }
 0x251   :  { %v132_v36 = vsub.f32 %v30_v18, %v130_v35 }
 0x253   :  { %134 = vrot.lane.b32.xlu1 %v132_v36, %s1310_s16 }
 0x2c5   :  { %v135_v37 = vpop.permute.xlu1 %134 }
 0x2c6   :  { %v137_v38 = vmul.f32 %v1244_v30, %v135_v37 }
 0x2c8   :  { %139 = vrot.lane.b32.xlu0 %v137_v38, %s1312_s26 }
 0x33a   :  { %v140_v39 = vpop.permute.xlu0 %139 }
 0x33b   :  { %v142_v40 = vadd.f32 %v1246_v34, %v140_v39  ;;  %v297_v34 = vrot.slane %v283_v33, 4 }
 0x33d   :  { %146 = vrot.lane.b32.xlu1 %v142_v40, %s1310_s16 }
 0x3af   :  { %v147_v41 = vpop.permute.xlu1 %146 }
 0x3b0   :  { %v149_v42 = vsel %vm38_vm0, %v147_v41, %v36_v19  ;;  %259 = vst.msk [vmem:[%s1773_s3] sm:$0x3] %vm258_vm2, %v147_v41 }
 0x3b1   :  { %1221 = vmatmul.mubr.msk.f32.vlgmr.msra.gmra.mxu1 %vm40_vm1, %v149_v42 }
 0x3b2   :  { %460 = vmatpush1.msra.mxu1 %v1351_v3  ;;  %507 = vmatprep.mubr.f32.mxu1 %v1309_v2 }
 0x3b3   :  { %461 = vmatprep.subr.mxu1 %v1356_v4 }
 0x3b4   :  { %462 = vmatpush1.msra.mxu1 %v1361_v5 }
 0x3b5   :  { %463 = vmatprep.subr.mxu1 %v1367_v6 }
 0x3b6   :  { %464 = vmatpush1.msra.mxu1 %v1374_v7 }
 0x3b7   :  { %465 = vmatprep.subr.mxu1 %v1381_v8 }
 0x3b8   :  { %466 = vmatpush1.msra.mxu1 %v1388_v9 }
 0x3b9   :  { %467 = vmatprep.subr.mxu1 %v1395_v10 }
 0x3ba   :  { %468 = vmatpush1.msra.mxu1 %v1402_v11 }
 0x3bb   :  { %469 = vmatprep.subr.mxu1 %v1409_v12 }
 0x3bc   :  { %470 = vmatpush1.msra.mxu1 %v1416_v13 }
 0x3bd   :  { %471 = vmatprep.subr.mxu1 %v1423_v14 }
 0x3be   :  { %472 = vmatpush1.msra.mxu1 %v1430_v15 }
 0x3bf   :  { %473 = vmatprep.subr.mxu1 %v1437_v16 }
 0x3c0   :  { %474 = vmatpush1.msra.mxu1 %v1444_v17 }
 0x3c1   :  { %724 = vmatprep.subr.mxu1 %v1341_v1 }
 0x471   :  { %v225_v45 = vpop.f32.mrf.mxu1 }
 0x472   :  { %v226_v46 = vadd.f32 %v225_v45, %v152_v44 }
 0x473   :  { %v227_v52 = vpop.f32.mrf.mxu1 }
 0x474   :  { %v1222_v47 = vmul.f32 -1.442695, %v226_v46  ;;  %v228_v53 = vadd.f32 %v227_v52, %v153_v51 }
 0x476   :  { %1247 = vpow2.f32 %v1222_v47 }
 0x483   :  { %v1248_v48 = vpop.eup %1247 }
 0x484   :  { %v233_v49 = vadd.f32 1.0, %v1248_v48 }
 0x486   :  { %1249 = vrcp.f32 %v233_v49 }
 0x493   :  { %v1250_v54 = vpop.eup %1249 }
 0x494   :  { %v236_v55 = vmul.f32 %v1250_v54, %v228_v53 }
 0x496   :  { %238 = vrot.lane.b32.xlu1 %v236_v55, %s1311_s25  ;;  %v262_v56 = vrot.slane %v236_v55, 6 }
 0x498   :  { %263 = vrot.lane.b32.xlu0 %v262_v56, %s1311_s25 }
 0x508   :  { %v239_v57 = vpop.permute.xlu1 %238 }
 0x509   :  { %v241_v58 = vadd.f32 %v239_v57, %v228_v53 }
 0x50a   :  { %v264_v59 = vpop.permute.xlu0 %263 }
 0x50b   :  { %1251 = vtanh.f32 %v241_v58  ;;  %v266_v60 = vadd.f32 %v264_v59, %v144_v50 }
 0x50d   :  { %1253 = vtanh.f32 %v266_v60 }
 0x518   :  { %v1252_v61 = vpop.eup %1251 }
 0x519   :  { %244 = vrot.lane.b32.xlu0 %v1252_v61, %s1311_s25 }
 0x51a   :  { %v1254_v62 = vpop.eup %1253 }
 0x51b   :  { %v269_v63 = vrot.slane %v1254_v62, 2 }
 0x51d   :  { %v271_v18 = vsub.f32 %v142_v40, %v269_v63  ;;  %v284_v40 = vld [vmem:[%s1772_s0 + $0x8] sm:$0x30] }
 0x51e   :  { %v298_v41 = vrot.slane %v284_v40, 4 }
 0x51f   :  { %273 = vrot.lane.b32.xlu1 %v271_v18, %s1312_s26 }
 0x58b   :  { %v245_v19 = vpop.permute.xlu0 %244 }
 0x58c   :  { %v247_v20 = vsub.f32 %v1336_v0, %v245_v19 }
 0x58e   :  { %249 = vrot.lane.b32.xlu0 %v247_v20, %s1311_s25 }
 0x591   :  { %v274_v21 = vpop.permute.xlu1 %273 }
 0x592   :  { %v276_v22 = vmul.f32 %v1250_v54, %v274_v21 }
 0x594   :  { %v278_v23 = vrot.slane %v276_v22, 6 }
 0x596   :  { %279 = vrot.lane.b32.xlu1 %v278_v23, %s1312_s26 }
 0x600   :  { %v250_v24 = vpop.permute.xlu0 %249 }
 0x601   :  { %v252_v25 = vmul.f32 %v1250_v54, %v250_v24  ;;  %v423_v24 = vld [vmem:[%s1772_s0] sm:$0xc0] }
 0x603   :  { %254 = vrot.lane.b32.xlu0 %v252_v25, %s1312_s26  ;;  %v437_v25 = vrot.slane %v423_v24, 6 }
 0x608   :  { %v280_v26 = vpop.permute.xlu1 %279 }
 0x609   :  { %v282_v27 = vadd.f32 %v1254_v62, %v280_v26 }
 0x60b   :  { %286 = vrot.lane.b32.xlu1 %v282_v27, %s1310_s16 }
 0x675   :  { %v255_v28 = vpop.permute.xlu0 %254 }
 0x676   :  { %v257_v29 = vadd.f32 %v1252_v61, %v255_v28 }
 0x678   :  { %261 = vst.msk [vmem:[%s1773_s3] sm:$0x3] %vm260_vm3, %v257_v29  ;;  %v290_v0 = vrot.slane %v257_v29, 6 }
 0x67d   :  { %v287_v30 = vpop.permute.xlu1 %286 }
 0x67e   :  { %v292_v31 = vsel %vm38_vm0, %v287_v30, %v290_v0  ;;  %399 = vst.msk [vmem:[%s1773_s3] sm:$0xc] %vm398_vm4, %v287_v30  ;;  %v424_v30 = vld [vmem:[%s1772_s0 + $0x8] sm:$0xc0] }
 0x67f   :  { %v294_v32 = vrot.slane %v292_v31, 2  ;;  %v438_v31 = vrot.slane %v424_v30, 6 }
 0x681   :  { %1223 = vmatmul.mubr.msk.f32.vlgmr.msra.gmra.mxu0 %vm40_vm1, %v294_v32 }
 0x682   :  { %594 = vmatpush1.msra.mxu0 %v1351_v3  ;;  %641 = vmatprep.mubr.f32.mxu0 %v1309_v2 }
 0x683   :  { %595 = vmatprep.subr.mxu0 %v1356_v4 }
 0x684   :  { %596 = vmatpush1.msra.mxu0 %v1361_v5 }
 0x685   :  { %597 = vmatprep.subr.mxu0 %v1367_v6 }
 0x686   :  { %598 = vmatpush1.msra.mxu0 %v1374_v7 }
 0x687   :  { %599 = vmatprep.subr.mxu0 %v1381_v8 }
 0x688   :  { %600 = vmatpush1.msra.mxu0 %v1388_v9 }
 0x689   :  { %601 = vmatprep.subr.mxu0 %v1395_v10 }
 0x68a   :  { %602 = vmatpush1.msra.mxu0 %v1402_v11 }
 0x68b   :  { %603 = vmatprep.subr.mxu0 %v1409_v12 }
 0x68c   :  { %604 = vmatpush1.msra.mxu0 %v1416_v13 }
 0x68d   :  { %605 = vmatprep.subr.mxu0 %v1423_v14 }
 0x68e   :  { %606 = vmatpush1.msra.mxu0 %v1430_v15 }
 0x68f   :  { %607 = vmatprep.subr.mxu0 %v1437_v16 }
 0x690   :  { %608 = vmatpush1.msra.mxu0 %v1444_v17 }
 0x691   :  { %862 = vmatprep.subr.mxu0 %v1341_v1 }
 0x741   :  { %v369_v35 = vpop.f32.mrf.mxu0 }
 0x742   :  { %v370_v36 = vadd.f32 %v369_v35, %v297_v34 }
 0x743   :  { %v371_v42 = vpop.f32.mrf.mxu0 }
 0x744   :  { %v1224_v37 = vmul.f32 -1.442695, %v370_v36  ;;  %v372_v43 = vadd.f32 %v371_v42, %v298_v41 }
 0x746   :  { %1255 = vpow2.f32 %v1224_v37 }
 0x753   :  { %v1256_v38 = vpop.eup %1255 }
 0x754   :  { %v377_v39 = vadd.f32 1.0, %v1256_v38 }
 0x756   :  { %1257 = vrcp.f32 %v377_v39 }
 0x763   :  { %v1258_v44 = vpop.eup %1257 }
 0x764   :  { %v380_v45 = vmul.f32 %v1258_v44, %v372_v43 }
 0x766   :  { %382 = vrot.lane.b32.xlu1 %v380_v45, %s1311_s25  ;;  %v401_v46 = vrot.slane %v380_v45, 4 }
 0x768   :  { %402 = vrot.lane.b32.xlu0 %v401_v46, %s1311_s25 }
 0x7d8   :  { %v383_v47 = vpop.permute.xlu1 %382 }
 0x7d9   :  { %v385_v48 = vadd.f32 %v383_v47, %v372_v43 }
 0x7da   :  { %v403_v49 = vpop.permute.xlu0 %402 }
 0x7db   :  { %1259 = vtanh.f32 %v385_v48  ;;  %v405_v50 = vadd.f32 %v403_v49, %v284_v40 }
 0x7dd   :  { %1261 = vtanh.f32 %v405_v50 }
 0x7e8   :  { %v1260_v51 = vpop.eup %1259 }
 0x7e9   :  { %v387_v52 = vsub.f32 %v257_v29, %v1260_v51 }
 0x7ea   :  { %v1262_v53 = vpop.eup %1261 }
 0x7eb   :  { %389 = vrot.lane.b32.xlu1 %v387_v52, %s1312_s26  ;;  %v408_v54 = vrot.slane %v1262_v53, 2 }
 0x7ed   :  { %v410_v55 = vsub.f32 %v282_v27, %v408_v54 }
 0x7ef   :  { %v412_v56 = vrot.slane %v410_v55, 2 }
 0x7f1   :  { %413 = vrot.lane.b32.xlu0 %v412_v56, %s1312_s26 }
 0x85d   :  { %v390_v57 = vpop.permute.xlu1 %389 }
 0x85e   :  { %v392_v58 = vmul.f32 %v1258_v44, %v390_v57 }
 0x860   :  { %394 = vrot.lane.b32.xlu1 %v392_v58, %s1312_s26 }
 0x863   :  { %v414_v59 = vpop.permute.xlu0 %413 }
 0x864   :  { %v416_v60 = vmul.f32 %v1258_v44, %v414_v59 }
 0x866   :  { %v418_v61 = vrot.slane %v416_v60, 4  ;;  %v563_v60 = vld [vmem:[%s1772_s0 + $0x10] sm:$0x3] }
 0x868   :  { %419 = vrot.lane.b32.xlu0 %v418_v61, %s1312_s26 }
 0x8d2   :  { %v395_v62 = vpop.permute.xlu1 %394 }
 0x8d3   :  { %v397_v63 = vadd.f32 %v1260_v51, %v395_v62 }
 0x8d5   :  { %400 = vst.msk [vmem:[%s1773_s3 + $0x2] sm:$0x3] %vm260_vm3, %v397_v63  ;;  %v430_v20 = vrot.slane %v397_v63, 4 }
 0x8da   :  { %v420_v18 = vpop.permute.xlu0 %419 }
 0x8db   :  { %v422_v19 = vadd.f32 %v1262_v53, %v420_v18 }
 0x8dd   :  { %426 = vrot.lane.b32.xlu0 %v422_v19, %s1310_s16 }
 0x94f   :  { %v427_v21 = vpop.permute.xlu0 %426 }
 0x950   :  { %v432_v22 = vsel %vm38_vm0, %v427_v21, %v430_v20  ;;  %539 = vst.msk [vmem:[%s1773_s3] sm:$0x30] %vm538_vm5, %v427_v21  ;;  %v564_v20 = vld [vmem:[%s1772_s0 + $0x18] sm:$0x3] }
 0x951   :  { %v434_v23 = vrot.slane %v432_v22, 4 }
 0x953   :  { %1225 = vmatmul.mubr.msk.f32.vlgmr.msra.gmra.mxu1 %vm40_vm1, %v434_v23 }
 0x954   :  { %725 = vmatpush1.msra.mxu1 %v1351_v3  ;;  %772 = vmatprep.mubr.f32.mxu1 %v1309_v2 }
 0x955   :  { %726 = vmatprep.subr.mxu1 %v1356_v4 }
 0x956   :  { %727 = vmatpush1.msra.mxu1 %v1361_v5 }
 0x957   :  { %728 = vmatprep.subr.mxu1 %v1367_v6 }
 0x958   :  { %729 = vmatpush1.msra.mxu1 %v1374_v7 }
 0x959   :  { %730 = vmatprep.subr.mxu1 %v1381_v8 }
 0x95a   :  { %731 = vmatpush1.msra.mxu1 %v1388_v9 }
 0x95b   :  { %732 = vmatprep.subr.mxu1 %v1395_v10 }
 0x95c   :  { %733 = vmatpush1.msra.mxu1 %v1402_v11 }
 0x95d   :  { %734 = vmatprep.subr.mxu1 %v1409_v12 }
 0x95e   :  { %735 = vmatpush1.msra.mxu1 %v1416_v13 }
 0x95f   :  { %736 = vmatprep.subr.mxu1 %v1423_v14 }
 0x960   :  { %737 = vmatpush1.msra.mxu1 %v1430_v15 }
 0x961   :  { %738 = vmatprep.subr.mxu1 %v1437_v16 }
 0x962   :  { %739 = vmatpush1.msra.mxu1 %v1444_v17 }
 0x963   :  { %1001 = vmatprep.subr.mxu1 %v1341_v1 }
 0xa13   :  { %v509_v26 = vpop.f32.mrf.mxu1 }
 0xa14   :  { %v510_v27 = vadd.f32 %v509_v26, %v437_v25 }
 0xa15   :  { %v511_v32 = vpop.f32.mrf.mxu1 }
 0xa16   :  { %v1226_v28 = vmul.f32 -1.442695, %v510_v27  ;;  %v512_v33 = vadd.f32 %v511_v32, %v438_v31 }
 0xa18   :  { %1263 = vpow2.f32 %v1226_v28 }
 0xa25   :  { %v1264_v29 = vpop.eup %1263 }
 0xa26   :  { %v517_v0 = vadd.f32 1.0, %v1264_v29 }
 0xa28   :  { %1265 = vrcp.f32 %v517_v0 }
 0xa35   :  { %v1266_v34 = vpop.eup %1265 }
 0xa36   :  { %v520_v35 = vmul.f32 %v1266_v34, %v512_v33 }
 0xa38   :  { %522 = vrot.lane.b32.xlu0 %v520_v35, %s1311_s25  ;;  %v541_v36 = vrot.slane %v520_v35, 2 }
 0xa3a   :  { %542 = vrot.lane.b32.xlu1 %v541_v36, %s1311_s25 }
 0xaaa   :  { %v523_v37 = vpop.permute.xlu0 %522 }
 0xaab   :  { %v525_v38 = vadd.f32 %v523_v37, %v512_v33 }
 0xaac   :  { %v543_v39 = vpop.permute.xlu1 %542 }
 0xaad   :  { %1267 = vtanh.f32 %v525_v38  ;;  %v545_v40 = vadd.f32 %v543_v39, %v424_v30 }
 0xaaf   :  { %1269 = vtanh.f32 %v545_v40 }
 0xaba   :  { %v1268_v41 = vpop.eup %1267 }
 0xabb   :  { %v527_v42 = vsub.f32 %v397_v63, %v1268_v41 }
 0xabc   :  { %v1270_v43 = vpop.eup %1269 }
 0xabd   :  { %529 = vrot.lane.b32.xlu0 %v527_v42, %s1312_s26  ;;  %v548_v44 = vrot.slane %v1270_v43, 2  ;;  %v692_v42 = vld [vmem:[%s1772_s0 + $0x10] sm:$0xc] }
 0xabf   :  { %v550_v45 = vsub.f32 %v422_v19, %v548_v44 }
 0xac1   :  { %v552_v46 = vrot.slane %v550_v45, 4 }
 0xac3   :  { %553 = vrot.lane.b32.xlu1 %v552_v46, %s1312_s26 }
 0xb2f   :  { %v530_v47 = vpop.permute.xlu0 %529 }
 0xb30   :  { %v532_v48 = vmul.f32 %v1266_v34, %v530_v47 }
 0xb32   :  { %534 = vrot.lane.b32.xlu0 %v532_v48, %s1312_s26 }
 0xb35   :  { %v554_v49 = vpop.permute.xlu1 %553 }
 0xb36   :  { %v556_v50 = vmul.f32 %v1266_v34, %v554_v49  ;;  %v693_v49 = vld [vmem:[%s1772_s0 + $0x18] sm:$0xc] }
 0xb38   :  { %v558_v51 = vrot.slane %v556_v50, 2  ;;  %v702_v50 = vrot.slane %v693_v49, 2 }
 0xb3a   :  { %559 = vrot.lane.b32.xlu1 %v558_v51, %s1312_s26 }
 0xba4   :  { %v535_v52 = vpop.permute.xlu0 %534 }
 0xba5   :  { %v537_v53 = vadd.f32 %v1268_v41, %v535_v52 }
 0xba7   :  { %540 = vst.msk [vmem:[%s1773_s3 + $0x4] sm:$0x3] %vm260_vm3, %v537_v53  ;;  %v570_v56 = vrot.slane %v537_v53, 2 }
 0xbac   :  { %v560_v54 = vpop.permute.xlu1 %559 }
 0xbad   :  { %v562_v55 = vadd.f32 %v1270_v43, %v560_v54  ;;  %v701_v43 = vrot.slane %v692_v42, 2 }
 0xbaf   :  { %566 = vrot.lane.b32.xlu1 %v562_v55, %s1310_s16 }
 0xc21   :  { %v567_v57 = vpop.permute.xlu1 %566 }
 0xc22   :  { %v572_v58 = vsel %vm38_vm0, %v567_v57, %v570_v56  ;;  %673 = vst.msk [vmem:[%s1773_s3] sm:$0xc0] %vm672_vm6, %v567_v57 }
 0xc23   :  { %v574_v59 = vrot.slane %v572_v58, 6 }
 0xc25   :  { %1227 = vmatmul.mubr.msk.f32.vlgmr.msra.gmra.mxu0 %vm40_vm1, %v574_v59 }
 0xc26   :  { %863 = vmatpush1.msra.mxu0 %v1351_v3  ;;  %910 = vmatprep.mubr.f32.mxu0 %v1309_v2 }
 0xc27   :  { %864 = vmatprep.subr.mxu0 %v1356_v4 }
 0xc28   :  { %865 = vmatpush1.msra.mxu0 %v1361_v5 }
 0xc29   :  { %866 = vmatprep.subr.mxu0 %v1367_v6 }
 0xc2a   :  { %867 = vmatpush1.msra.mxu0 %v1374_v7 }
 0xc2b   :  { %868 = vmatprep.subr.mxu0 %v1381_v8 }
 0xc2c   :  { %869 = vmatpush1.msra.mxu0 %v1388_v9 }
 0xc2d   :  { %870 = vmatprep.subr.mxu0 %v1395_v10 }
 0xc2e   :  { %871 = vmatpush1.msra.mxu0 %v1402_v11 }
 0xc2f   :  { %872 = vmatprep.subr.mxu0 %v1409_v12 }
 0xc30   :  { %873 = vmatpush1.msra.mxu0 %v1416_v13 }
 0xc31   :  { %874 = vmatprep.subr.mxu0 %v1423_v14 }
 0xc32   :  { %875 = vmatpush1.msra.mxu0 %v1430_v15 }
 0xc33   :  { %876 = vmatprep.subr.mxu0 %v1437_v16 }
 0xc34   :  { %877 = vmatpush1.msra.mxu0 %v1444_v17 }
 0xc35   :  { %1134 = vmatprep.subr.mxu0 %v1341_v1 }
 0xce5   :  { %v643_v61 = vpop.f32.mrf.mxu0 }
 0xce6   :  { %v644_v62 = vadd.f32 %v643_v61, %v563_v60 }
 0xce7   :  { %v645_v21 = vpop.f32.mrf.mxu0 }
 0xce8   :  { %v1228_v63 = vmul.f32 -1.442695, %v644_v62  ;;  %v646_v22 = vadd.f32 %v645_v21, %v564_v20 }
 0xcea   :  { %1271 = vpow2.f32 %v1228_v63 }
 0xcf7   :  { %v1272_v18 = vpop.eup %1271 }
 0xcf8   :  { %v651_v19 = vadd.f32 1.0, %v1272_v18 }
 0xcfa   :  { %1273 = vrcp.f32 %v651_v19 }
 0xd07   :  { %v1274_v23 = vpop.eup %1273 }
 0xd08   :  { %v654_v24 = vmul.f32 %v1274_v23, %v646_v22 }
 0xd0a   :  { %656 = vrot.lane.b32.xlu0 %v654_v24, %s1311_s25 }
 0xd7c   :  { %v657_v1 = vpop.permute.xlu0 %656 }
 0xd7d   :  { %v659_v25 = vadd.f32 %v657_v1, %v646_v22  ;;  %v675_v26 = vadd.f32 %v657_v1, %v564_v20 }
 0xd7f   :  { %1275 = vtanh.f32 %v659_v25 }
 0xd80   :  { %1277 = vtanh.f32 %v675_v26 }
 0xd8c   :  { %v1276_v27 = vpop.eup %1275 }
 0xd8d   :  { %v1278_v28 = vpop.eup %1277  ;;  %v661_v29 = vsub.f32 %v537_v53, %v1276_v27 }
 0xd8e   :  { %v678_v0 = vrot.slane %v1278_v28, 2 }
 0xd8f   :  { %663 = vrot.lane.b32.xlu0 %v661_v29, %s1312_s26 }
 0xd90   :  { %v680_v30 = vsub.f32 %v562_v55, %v678_v0 }
 0xd92   :  { %v682_v31 = vrot.slane %v680_v30, 6 }
 0xd94   :  { %683 = vrot.lane.b32.xlu1 %v682_v31, %s1312_s26 }
 0xe01   :  { %v664_v32 = vpop.permute.xlu0 %663 }
 0xe02   :  { %v666_v33 = vmul.f32 %v1274_v23, %v664_v32 }
 0xe04   :  { %668 = vrot.lane.b32.xlu0 %v666_v33, %s1312_s26 }
 0xe06   :  { %v684_v34 = vpop.permute.xlu1 %683 }
 0xe07   :  { %v686_v35 = vmul.f32 %v1274_v23, %v684_v34 }
 0xe09   :  { %688 = vrot.lane.b32.xlu1 %v686_v35, %s1312_s26 }
 0xe76   :  { %v669_v36 = vpop.permute.xlu0 %668 }
 0xe77   :  { %v671_v37 = vadd.f32 %v1276_v27, %v669_v36 }
 0xe79   :  { %674 = vst.msk [vmem:[%s1773_s3 + $0x6] sm:$0x3] %vm260_vm3, %v671_v37 }
 0xe7b   :  { %v689_v38 = vpop.permute.xlu1 %688 }
 0xe7c   :  { %v691_v39 = vadd.f32 %v1278_v28, %v689_v38 }
 0xe7e   :  { %695 = vrot.lane.b32.xlu1 %v691_v39, %s1310_s16 }
 0xef0   :  { %v696_v40 = vpop.permute.xlu1 %695 }
 0xef1   :  { %v698_v41 = vsel %vm38_vm0, %v696_v40, %v671_v37  ;;  %803 = vst.msk [vmem:[%s1773_s3 + $0x8] sm:$0x3] %vm258_vm2, %v696_v40 }
 0xef2   :  { %1229 = vmatmul.mubr.msk.f32.vlgmr.msra.gmra.mxu1 %vm40_vm1, %v698_v41 }
 0xef3   :  { %1002 = vmatpush1.msra.mxu1 %v1351_v3  ;;  %1049 = vmatprep.mubr.f32.mxu1 %v1309_v2 }
 0xef4   :  { %1003 = vmatprep.subr.mxu1 %v1356_v4 }
 0xef5   :  { %1004 = vmatpush1.msra.mxu1 %v1361_v5 }
 0xef6   :  { %1005 = vmatprep.subr.mxu1 %v1367_v6 }
 0xef7   :  { %1006 = vmatpush1.msra.mxu1 %v1374_v7 }
 0xef8   :  { %1007 = vmatprep.subr.mxu1 %v1381_v8 }
 0xef9   :  { %1008 = vmatpush1.msra.mxu1 %v1388_v9 }
 0xefa   :  { %1009 = vmatprep.subr.mxu1 %v1395_v10 }
 0xefb   :  { %1010 = vmatpush1.msra.mxu1 %v1402_v11 }
 0xefc   :  { %1011 = vmatprep.subr.mxu1 %v1409_v12 }
 0xefd   :  { %1012 = vmatpush1.msra.mxu1 %v1416_v13 }
 0xefe   :  { %1013 = vmatprep.subr.mxu1 %v1423_v14 }
 0xeff   :  { %1014 = vmatpush1.msra.mxu1 %v1430_v15 }
 0xf00   :  { %1015 = vmatprep.subr.mxu1 %v1437_v16 }
 0xf01   :  { %1016 = vmatpush1.msra.mxu1 %v1444_v17 }
 0xfb2   :  { %v774_v44 = vpop.f32.mrf.mxu1 }
 0xfb3   :  { %v775_v45 = vadd.f32 %v774_v44, %v701_v43 }
 0xfb4   :  { %v776_v51 = vpop.f32.mrf.mxu1 }
 0xfb5   :  { %v1230_v46 = vmul.f32 -1.442695, %v775_v45  ;;  %v777_v52 = vadd.f32 %v776_v51, %v702_v50  ;;  %v965_v51 = vld [vmem:[%s1772_s0 + $0x10] sm:$0xc0] }
 0xfb7   :  { %1279 = vpow2.f32 %v1230_v46 }
 0xfc4   :  { %v1280_v47 = vpop.eup %1279 }
 0xfc5   :  { %v782_v48 = vadd.f32 1.0, %v1280_v47 }
 0xfc7   :  { %1281 = vrcp.f32 %v782_v48 }
 0xfd4   :  { %v1282_v53 = vpop.eup %1281 }
 0xfd5   :  { %v785_v54 = vmul.f32 %v1282_v53, %v777_v52 }
 0xfd7   :  { %787 = vrot.lane.b32.xlu1 %v785_v54, %s1311_s25  ;;  %v805_v55 = vrot.slane %v785_v54, 6 }
 0xfd9   :  { %806 = vrot.lane.b32.xlu0 %v805_v55, %s1311_s25 }
0x1049   :  { %v788_v56 = vpop.permute.xlu1 %787 }
0x104a   :  { %v790_v57 = vadd.f32 %v788_v56, %v777_v52  ;;  %v979_v52 = vrot.slane %v965_v51, 6 }
0x104b   :  { %v807_v58 = vpop.permute.xlu0 %806 }
0x104c   :  { %1283 = vtanh.f32 %v790_v57  ;;  %v809_v59 = vadd.f32 %v807_v58, %v693_v49  ;;  %v966_v58 = vld [vmem:[%s1772_s0 + $0x18] sm:$0xc0] }
0x104e   :  { %1285 = vtanh.f32 %v809_v59  ;;  %v980_v59 = vrot.slane %v966_v58, 6 }
0x1059   :  { %v1284_v60 = vpop.eup %1283 }
0x105a   :  { %v792_v61 = vsub.f32 %v671_v37, %v1284_v60 }
0x105b   :  { %v1286_v62 = vpop.eup %1285 }
0x105c   :  { %794 = vrot.lane.b32.xlu1 %v792_v61, %s1312_s26  ;;  %v812_v63 = vrot.slane %v1286_v62, 2 }
0x105e   :  { %v814_v18 = vsub.f32 %v691_v39, %v812_v63 }
0x1060   :  { %816 = vrot.lane.b32.xlu0 %v814_v18, %s1312_s26 }
0x10ce   :  { %v795_v19 = vpop.permute.xlu1 %794 }
0x10cf   :  { %v797_v20 = vmul.f32 %v1282_v53, %v795_v19 }
0x10d1   :  { %799 = vrot.lane.b32.xlu1 %v797_v20, %s1312_s26 }
0x10d2   :  { %v817_v21 = vpop.permute.xlu0 %816 }
0x10d3   :  { %v819_v22 = vmul.f32 %v1282_v53, %v817_v21 }
0x10d5   :  { %v821_v23 = vrot.slane %v819_v22, 6 }
0x10d7   :  { %822 = vrot.lane.b32.xlu0 %v821_v23, %s1312_s26 }
0x1143   :  { %v800_v24 = vpop.permute.xlu1 %799 }
0x1144   :  { %v802_v1 = vadd.f32 %v1284_v60, %v800_v24 }
0x1146   :  { %804 = vst.msk [vmem:[%s1773_s3 + $0x8] sm:$0x3] %vm260_vm3, %v802_v1  ;;  %v833_v27 = vrot.slane %v802_v1, 6 }
0x1149   :  { %v823_v25 = vpop.permute.xlu0 %822 }
0x114a   :  { %v825_v26 = vadd.f32 %v1286_v62, %v823_v25 }
0x114c   :  { %829 = vrot.lane.b32.xlu0 %v825_v26, %s1310_s16 }
0x11be   :  { %v830_v28 = vpop.permute.xlu0 %829 }
0x11bf   :  { %v835_v29 = vsel %vm38_vm0, %v830_v28, %v833_v27  ;;  %941 = vst.msk [vmem:[%s1773_s3 + $0x8] sm:$0xc] %vm398_vm4, %v830_v28 }
0x11c0   :  { %v837_v0 = vrot.slane %v835_v29, 2 }
0x11c2   :  { %1231 = vmatmul.mubr.msk.f32.vlgmr.msra.gmra.mxu0 %vm40_vm1, %v837_v0 }
0x11c3   :  { %1135 = vmatpush1.msra.mxu0 %v1351_v3  ;;  %1182 = vmatprep.mubr.f32.mxu0 %v1309_v2  ;;  %v826_v2 = vld [vmem:[%s1772_s0 + $0x10] sm:$0x30] }
0x11c4   :  { %1136 = vmatprep.subr.mxu0 %v1356_v4  ;;  %v840_v3 = vrot.slane %v826_v2, 4 }
0x11c5   :  { %1137 = vmatpush1.msra.mxu0 %v1361_v5 }
0x11c6   :  { %1138 = vmatprep.subr.mxu0 %v1367_v6 }
0x11c7   :  { %1139 = vmatpush1.msra.mxu0 %v1374_v7 }
0x11c8   :  { %1140 = vmatprep.subr.mxu0 %v1381_v8 }
0x11c9   :  { %1141 = vmatpush1.msra.mxu0 %v1388_v9  ;;  %v827_v9 = vld [vmem:[%s1772_s0 + $0x18] sm:$0x30] }
0x11ca   :  { %1142 = vmatprep.subr.mxu0 %v1395_v10  ;;  %v841_v10 = vrot.slane %v827_v9, 4 }
0x11cb   :  { %1143 = vmatpush1.msra.mxu0 %v1402_v11 }
0x11cc   :  { %1144 = vmatprep.subr.mxu0 %v1409_v12 }
0x11cd   :  { %1145 = vmatpush1.msra.mxu0 %v1416_v13 }
0x11ce   :  { %1146 = vmatprep.subr.mxu0 %v1423_v14 }
0x11cf   :  { %1147 = vmatpush1.msra.mxu0 %v1430_v15 }
0x11d0   :  { %1148 = vmatprep.subr.mxu0 %v1437_v16 }
0x11d1   :  { %1149 = vmatpush1.msra.mxu0 %v1444_v17 }
0x1282   :  { %v912_v4 = vpop.f32.mrf.mxu0 }
0x1283   :  { %v913_v5 = vadd.f32 %v912_v4, %v840_v3 }
0x1284   :  { %v914_v11 = vpop.f32.mrf.mxu0 }
0x1285   :  { %v1232_v6 = vmul.f32 -1.442695, %v913_v5  ;;  %v915_v12 = vadd.f32 %v914_v11, %v841_v10 }
0x1287   :  { %1287 = vpow2.f32 %v1232_v6 }
0x1294   :  { %v1288_v7 = vpop.eup %1287 }
0x1295   :  { %v920_v8 = vadd.f32 1.0, %v1288_v7 }
0x1297   :  { %1289 = vrcp.f32 %v920_v8 }
0x12a4   :  { %v1290_v13 = vpop.eup %1289 }
0x12a5   :  { %v923_v14 = vmul.f32 %v1290_v13, %v915_v12 }
0x12a7   :  { %925 = vrot.lane.b32.xlu0 %v923_v14, %s1311_s25  ;;  %v943_v15 = vrot.slane %v923_v14, 4 }
0x12a9   :  { %944 = vrot.lane.b32.xlu1 %v943_v15, %s1311_s25 }
0x1319   :  { %v926_v16 = vpop.permute.xlu0 %925 }
0x131a   :  { %v928_v17 = vadd.f32 %v926_v16, %v915_v12  ;;  %v1104_v12 = vld [vmem:[%s1772_s0 + $0x20] sm:$0x3] }
0x131b   :  { %v945_v30 = vpop.permute.xlu1 %944 }
0x131c   :  { %1291 = vtanh.f32 %v928_v17  ;;  %v947_v31 = vadd.f32 %v945_v30, %v827_v9  ;;  %v1105_v30 = vld [vmem:[%s1772_s0 + $0x28] sm:$0x3] }
0x131e   :  { %1293 = vtanh.f32 %v947_v31 }
0x1329   :  { %v1292_v32 = vpop.eup %1291 }
0x132a   :  { %v930_v33 = vsub.f32 %v802_v1, %v1292_v32 }
0x132b   :  { %v1294_v34 = vpop.eup %1293 }
0x132c   :  { %932 = vrot.lane.b32.xlu0 %v930_v33, %s1312_s26  ;;  %v950_v35 = vrot.slane %v1294_v34, 2 }
0x132e   :  { %v952_v36 = vsub.f32 %v825_v26, %v950_v35 }
0x1330   :  { %v954_v37 = vrot.slane %v952_v36, 2 }
0x1332   :  { %955 = vrot.lane.b32.xlu1 %v954_v37, %s1312_s26 }
0x139e   :  { %v933_v38 = vpop.permute.xlu0 %932 }
0x139f   :  { %v935_v39 = vmul.f32 %v1290_v13, %v933_v38 }
0x13a1   :  { %937 = vrot.lane.b32.xlu0 %v935_v39, %s1312_s26 }
0x13a4   :  { %v956_v40 = vpop.permute.xlu1 %955 }
0x13a5   :  { %v958_v41 = vmul.f32 %v1290_v13, %v956_v40 }
0x13a7   :  { %v960_v42 = vrot.slane %v958_v41, 4 }
0x13a9   :  { %961 = vrot.lane.b32.xlu1 %v960_v42, %s1312_s26 }
0x1413   :  { %v938_v43 = vpop.permute.xlu0 %937 }
0x1414   :  { %v940_v44 = vadd.f32 %v1292_v32, %v938_v43 }
0x1416   :  { %942 = vst.msk [vmem:[%s1773_s3 + $0xa] sm:$0x3] %vm260_vm3, %v940_v44  ;;  %v972_v47 = vrot.slane %v940_v44, 4 }
0x141b   :  { %v962_v45 = vpop.permute.xlu1 %961 }
0x141c   :  { %v964_v46 = vadd.f32 %v1294_v34, %v962_v45 }
0x141e   :  { %968 = vrot.lane.b32.xlu1 %v964_v46, %s1310_s16 }
0x1490   :  { %v969_v48 = vpop.permute.xlu1 %968 }
0x1491   :  { %v974_v49 = vsel %vm38_vm0, %v969_v48, %v972_v47  ;;  %1080 = vst.msk [vmem:[%s1773_s3 + $0x8] sm:$0x30] %vm538_vm5, %v969_v48 }
0x1492   :  { %v976_v50 = vrot.slane %v974_v49, 4 }
0x1494   :  { %1233 = vmatmul.mubr.msk.f32.vlgmr.msra.gmra.mxu1 %vm40_vm1, %v976_v50 }
0x1554   :  { %v1051_v53 = vpop.f32.mrf.mxu1 }
0x1555   :  { %v1052_v54 = vadd.f32 %v1051_v53, %v979_v52 }
0x1556   :  { %v1053_v60 = vpop.f32.mrf.mxu1 }
0x1557   :  { %v1234_v55 = vmul.f32 -1.442695, %v1052_v54  ;;  %v1054_v61 = vadd.f32 %v1053_v60, %v980_v59 }
0x1559   :  { %1295 = vpow2.f32 %v1234_v55 }
0x1566   :  { %v1296_v56 = vpop.eup %1295 }
0x1567   :  { %v1059_v57 = vadd.f32 1.0, %v1296_v56 }
0x1569   :  { %1297 = vrcp.f32 %v1059_v57 }
0x1576   :  { %v1298_v62 = vpop.eup %1297 }
0x1577   :  { %v1062_v63 = vmul.f32 %v1298_v62, %v1054_v61 }
0x1579   :  { %1064 = vrot.lane.b32.xlu1 %v1062_v63, %s1311_s25  ;;  %v1082_v18 = vrot.slane %v1062_v63, 2 }
0x157b   :  { %1083 = vrot.lane.b32.xlu0 %v1082_v18, %s1311_s25 }
0x15eb   :  { %v1065_v19 = vpop.permute.xlu1 %1064 }
0x15ec   :  { %v1067_v20 = vadd.f32 %v1065_v19, %v1054_v61 }
0x15ed   :  { %v1084_v21 = vpop.permute.xlu0 %1083 }
0x15ee   :  { %1299 = vtanh.f32 %v1067_v20  ;;  %v1086_v22 = vadd.f32 %v1084_v21, %v966_v58 }
0x15f0   :  { %1301 = vtanh.f32 %v1086_v22 }
0x15fb   :  { %v1300_v23 = vpop.eup %1299 }
0x15fc   :  { %v1069_v24 = vsub.f32 %v940_v44, %v1300_v23 }
0x15fd   :  { %v1302_v1 = vpop.eup %1301 }
0x15fe   :  { %1071 = vrot.lane.b32.xlu1 %v1069_v24, %s1312_s26  ;;  %v1089_v25 = vrot.slane %v1302_v1, 2 }
0x1600   :  { %v1091_v26 = vsub.f32 %v964_v46, %v1089_v25 }
0x1602   :  { %v1093_v27 = vrot.slane %v1091_v26, 4 }
0x1604   :  { %1094 = vrot.lane.b32.xlu0 %v1093_v27, %s1312_s26 }
0x1670   :  { %v1072_v28 = vpop.permute.xlu1 %1071 }
0x1671   :  { %v1074_v29 = vmul.f32 %v1298_v62, %v1072_v28 }
0x1673   :  { %1076 = vrot.lane.b32.xlu1 %v1074_v29, %s1312_s26 }
0x1676   :  { %v1095_v0 = vpop.permute.xlu0 %1094 }
0x1677   :  { %v1097_v2 = vmul.f32 %v1298_v62, %v1095_v0 }
0x1679   :  { %v1099_v3 = vrot.slane %v1097_v2, 2 }
0x167b   :  { %1100 = vrot.lane.b32.xlu0 %v1099_v3, %s1312_s26 }
0x16e5   :  { %v1077_v4 = vpop.permute.xlu1 %1076 }
0x16e6   :  { %v1079_v5 = vadd.f32 %v1300_v23, %v1077_v4 }
0x16e8   :  { %1081 = vst.msk [vmem:[%s1773_s3 + $0xc] sm:$0x3] %vm260_vm3, %v1079_v5  ;;  %v1111_v8 = vrot.slane %v1079_v5, 2 }
0x16ed   :  { %v1101_v6 = vpop.permute.xlu0 %1100 }
0x16ee   :  { %v1103_v7 = vadd.f32 %v1302_v1, %v1101_v6 }
0x16f0   :  { %1107 = vrot.lane.b32.xlu0 %v1103_v7, %s1310_s16 }
0x1762   :  { %v1108_v9 = vpop.permute.xlu0 %1107 }
0x1763   :  { %v1113_v10 = vsel %vm38_vm0, %v1108_v9, %v1111_v8  ;;  %1213 = vst.msk [vmem:[%s1773_s3 + $0x8] sm:$0xc0] %vm672_vm6, %v1108_v9 }
0x1764   :  { %v1115_v11 = vrot.slane %v1113_v10, 6 }
0x1766   :  { %1235 = vmatmul.mubr.msk.f32.vlgmr.msra.gmra.mxu0 %vm40_vm1, %v1115_v11 }
0x1826   :  { %v1184_v13 = vpop.f32.mrf.mxu0 }
0x1827   :  { %v1185_v14 = vadd.f32 %v1184_v13, %v1104_v12 }
0x1828   :  { %v1186_v31 = vpop.f32.mrf.mxu0 }
0x1829   :  { %v1236_v15 = vmul.f32 -1.442695, %v1185_v14  ;;  %v1187_v32 = vadd.f32 %v1186_v31, %v1105_v30 }
0x182b   :  { %1303 = vpow2.f32 %v1236_v15 }
0x1838   :  { %v1304_v16 = vpop.eup %1303 }
0x1839   :  { %v1192_v17 = vadd.f32 1.0, %v1304_v16 }
0x183b   :  { %1305 = vrcp.f32 %v1192_v17 }
0x1848   :  { %v1306_v33 = vpop.eup %1305 }
0x1849   :  { %v1195_v34 = vmul.f32 %v1306_v33, %v1187_v32 }
0x184b   :  { %1197 = vrot.lane.b32.xlu1 %v1195_v34, %s1311_s25 }
0x18bd   :  { %v1198_v35 = vpop.permute.xlu1 %1197 }
0x18be   :  { %v1200_v36 = vadd.f32 %v1198_v35, %v1187_v32 }
0x18c0   :  { %1307 = vtanh.f32 %v1200_v36 }
0x18cd   :  { %v1308_v37 = vpop.eup %1307 }
0x18ce   :  { %v1202_v38 = vsub.f32 %v1079_v5, %v1308_v37 }
0x18d0   :  { %1204 = vrot.lane.b32.xlu0 %v1202_v38, %s1312_s26 }
0x1942   :  { %v1205_v39 = vpop.permute.xlu0 %1204 }
0x1943   :  { %v1207_v40 = vmul.f32 %v1306_v33, %v1205_v39 }
0x1945   :  { %1209 = vrot.lane.b32.xlu1 %v1207_v40, %s1312_s26 }
0x19b7   :  { %v1210_v41 = vpop.permute.xlu1 %1209 }
0x19b8   :  { %v1212_v42 = vadd.f32 %v1308_v37, %v1210_v41 }
0x19ba   :  { %1214 = vst.msk [vmem:[%s1773_s3 + $0xe] sm:$0x3] %vm260_vm3, %v1212_v42 }

</bundles_post_ra>
